<compile_context>
chip_gen: v7x
topology: tpu7x:2x2x1
jax: 0.10.0
libtpu: 0.0.40
codegen_flags: <defaults>
</compile_context>

<pallas_src>
import functools
import numpy as np

import jax
import jax.numpy as jnp
from jax.experimental import pallas as pl
from jax.experimental.pallas import tpu as pltpu


# ----------------------------- Pallas kernels --------------------------------

def _kivi_body(x_ref, qw_ref, s_ref, xg_ref, z_ref, acc_ref, *,
               bits, rows_per_group, compute_dtype, dequant_dtype):
    """One k-step: init accumulator with the folded zero-correction (k==0) and
    accumulate the per-plane  x_plane @ (scale * codes)  dots."""
    vals = 32 // bits
    mask = (1 << bits) - 1
    k = pl.program_id(2)

    @pl.when(k == 0)
    def _init():
        # sum_k x[m,k] * z[g(k),n]  ==  (group-sums of x) @ Z   (zeros = scale*zero)
        xg = xg_ref[...]                       # (tm, G) f32
        z = z_ref[...]                         # (G, tn) f32
        if z.shape[0] == 1:                    # single quantization group
            corr = xg * z                      # (tm,1)*(1,tn) broadcast
        else:
            corr = jnp.dot(xg, z, preferred_element_type=jnp.float32)
        acc_ref[...] = -corr

    q = qw_ref[...]                            # (rb, tn) int32 packed codes
    rb, tn = q.shape
    ng = s_ref.shape[0]                        # groups covered by this k-step

    # Per-group scale expanded once per k-step (sublane repeat), in dequant dtype.
    s_e = jnp.broadcast_to(s_ref[...][:, None, :],
                           (ng, rows_per_group, tn)).reshape(rb, tn)

    for j in range(vals):                      # static unroll over sub-word planes
        # Arithmetic >> followed by & mask is exact for the low `bits` bits
        # even when the packed int32 word is negative.  Shift skipped for j==0.
        codes = (q & mask) if j == 0 else ((q >> (bits * j)) & mask)
        c = codes.astype(jnp.float32)
        if dequant_dtype != jnp.float32:
            c = c.astype(dequant_dtype)
        w = (c * s_e).astype(compute_dtype)
        acc_ref[...] += jnp.dot(x_ref[j], w, preferred_element_type=jnp.float32)


def _kivi_kernel(x_ref, qw_ref, s_ref, xg_ref, z_ref, o_ref, acc_ref, *,
                 bits, rows_per_group, compute_dtype, dequant_dtype):
    _kivi_body(x_ref, qw_ref, s_ref, xg_ref, z_ref, acc_ref,
               bits=bits, rows_per_group=rows_per_group,
               compute_dtype=compute_dtype, dequant_dtype=dequant_dtype)

    @pl.when(pl.program_id(2) == pl.num_programs(2) - 1)
    def _finalize():
        o_ref[...] = acc_ref[...].astype(o_ref.dtype)


def _kivi_kernel_bias(x_ref, qw_ref, s_ref, xg_ref, z_ref, b_ref, o_ref, acc_ref, *,
                      bits, rows_per_group, compute_dtype, dequant_dtype):
    _kivi_body(x_ref, qw_ref, s_ref, xg_ref, z_ref, acc_ref,
               bits=bits, rows_per_group=rows_per_group,
               compute_dtype=compute_dtype, dequant_dtype=dequant_dtype)

    @pl.when(pl.program_id(2) == pl.num_programs(2) - 1)
    def _finalize():
        o_ref[...] = (acc_ref[...] + b_ref[...]).astype(o_ref.dtype)


# ------------------------------ tile helpers ----------------------------------

def _round_up(a, b):
    return -(-a // b) * b


def _device_kind():
    try:
        return jax.devices()[0].device_kind.lower()
    except Exception:
        return ""


def _is_pre_v6(kind):
    return any(t in kind for t in ("v2", "v3", "v4", "v5"))


def _is_v7(kind):
    return "v7" in kind


def _default_dequant_dtype(compute_dtype):
    """bf16 dequant math on v6e/v7x (bf16 VALU); f32 on v5e/older or unknown."""
    if jnp.dtype(compute_dtype) != jnp.dtype(jnp.bfloat16):
        return jnp.dtype(jnp.float32)
    kind = _device_kind()
    if kind == "" or _is_pre_v6(kind):
        return jnp.dtype(jnp.float32)
    return jnp.dtype(jnp.bfloat16)


def _vmem_cap_bytes():
    kind = _device_kind()
    if kind == "" or _is_v7(kind):
        return 48 * 2 ** 20          # v7x has only 64 MiB physical VMEM
    return 100 * 2 ** 20             # v5e/v6e: 128 MiB physical


def _pick_rb(R, rows_per_group, num_groups, target_rb):
    """Packed-row tile: divides R, multiple of rows_per_group, layout-legal."""
    cands = []
    for rb in range(rows_per_group, R + 1, rows_per_group):
        if R % rb:
            continue
        ng = rb // rows_per_group
        if rb != R and rb % 128 != 0:          # last dim of the x3 block
            continue
        if ng != num_groups and ng % 8 != 0:   # sublane dim of scales block
            continue
        cands.append(rb)
    le = [c for c in cands if c <= target_rb]
    return max(le) if le else min(cands)       # rb == R is always valid


def _pick_tn(N, target=512):
    cands = sorted({c for c in range(128, N + 1, 128) if N % c == 0} | {N})
    le = [c for c in cands if c <= target]
    return max(le) if le else min(cands)


# ------------------------------- wrapper --------------------------------------

def kivi_linear_forward(x, qweight, scales, zeros, bias=None, *,
                        bits, group_size,
                        tile_m=None, tile_n=None, tile_r=None,
                        compute_dtype=None, dequant_dtype=None):
    """Forward pass matching KIVILinear.forward (dequantize + matmul + bias)."""
    if bits not in (2, 4):
        raise NotImplementedError("only 2/4-bit supported in this Pallas port")
    vals = 32 // bits
    x_dtype = x.dtype
    K = x.shape[-1]
    R, N = qweight.shape
    if R * vals != K:
        raise ValueError("qweight rows inconsistent with in_features/bits")
    if group_size is None or group_size == -1:
        group_size = K
    if K % group_size != 0:
        raise ValueError("in_features must be divisible by group_size")
    if group_size % vals != 0:
        raise ValueError("group_size must be a multiple of 32//bits")
    G = K // group_size
    assert scales.shape == (G, N) and zeros.shape == (G, N)
    rows_per_group = group_size // vals

    if compute_dtype is None:
        compute_dtype = (jnp.bfloat16
                         if (x_dtype == jnp.bfloat16 or x_dtype == jnp.float16)
                         else x_dtype)
    compute_dtype = jnp.dtype(compute_dtype)
    if dequant_dtype is None:
        dequant_dtype = _default_dequant_dtype(compute_dtype)
    dequant_dtype = jnp.dtype(dequant_dtype)

    lead = x.shape[:-1]
    x2 = x.reshape(-1, K).astype(compute_dtype)
    M = x2.shape[0]

    # --- tile sizes -----------------------------------------------------------
    if tile_m is not None:
        tm = tile_m
    elif M >= 512:
        tm = 512
    elif M >= 256:
        tm = 256
    else:
        tm = _round_up(max(M, 1), 8)
    assert tm % 8 == 0
    M_pad = _round_up(M, tm)
    if M_pad != M:
        x2 = jnp.pad(x2, ((0, M_pad - M), (0, 0)))

    tn = tile_n if tile_n is not None else _pick_tn(N, target=1024 if M >= 512 else 512)
    assert N % tn == 0 and (tn % 128 == 0 or tn == N)

    rb = tile_r if tile_r is not None else _pick_rb(
        R, rows_per_group, G, max(2048 // vals, 256))
    assert R % rb == 0 and rb % rows_per_group == 0
    assert rb == R or rb % 128 == 0
    ng = rb // rows_per_group
    assert ng == G or ng % 8 == 0

    # Keep both TensorCores busy on v7x when the natural grid would be (1, 1, K).
    if (tile_n is None and _is_v7(_device_kind())
            and (M_pad // tm) * (N // tn) < 2):
        tn2 = _pick_tn(N, target=max(N // 2, 128))
        if tn2 < N:
            tn = tn2

    # --- activation preprocessing --------------------------------------------
    # Plane-major layout: x3[j, m, r] = x[m, r*vals + j]
    x3 = x2.reshape(M_pad, R, vals).transpose(2, 0, 1)       # (vals, M_pad, R)
    # Per-group activation sums for the folded zero-point correction.
    xg = x2.astype(jnp.float32).reshape(M_pad, G, group_size).sum(axis=-1)  # (M_pad, G)

    scales_q = scales.astype(dequant_dtype)
    zeros_f = zeros.astype(jnp.float32)

    grid = (M_pad // tm, N // tn, R // rb)

    in_specs = [
        pl.BlockSpec((vals, tm, rb), lambda i, j, k: (0, i, k)),   # activations (planes)
        pl.BlockSpec((rb, tn),       lambda i, j, k: (k, j)),      # packed weights
        pl.BlockSpec((ng, tn),       lambda i, j, k: (k, j)),      # scales
        pl.BlockSpec((tm, G),        lambda i, j, k: (i, 0)),      # group sums of x
        pl.BlockSpec((G, tn),        lambda i, j, k: (0, j)),      # scale*zero (all groups)
    ]
    operands = [x3, qweight, scales_q, xg, zeros_f]

    if bias is not None:
        in_specs.append(pl.BlockSpec((1, tn), lambda i, j, k: (0, j)))
        operands.append(bias.reshape(1, N).astype(jnp.float32))
        kernel = functools.partial(_kivi_kernel_bias, bits=bits,
                                   rows_per_group=rows_per_group,
                                   compute_dtype=compute_dtype,
                                   dequant_dtype=dequant_dtype)
    else:
        kernel = functools.partial(_kivi_kernel, bits=bits,
                                   rows_per_group=rows_per_group,
                                   compute_dtype=compute_dtype,
                                   dequant_dtype=dequant_dtype)

    # VMEM budget: double-buffered blocks + accumulator + in-kernel temporaries,
    # clamped generation-aware (48 MiB cap on v7x, ~100 MiB on v5e/v6e).
    cbytes = compute_dtype.itemsize
    dbytes = dequant_dtype.itemsize
    obytes = jnp.dtype(x_dtype).itemsize
    est = (2 * vals * tm * rb * cbytes        # x3 blocks
           + 2 * rb * tn * 4                  # qweight blocks
           + 2 * ng * tn * dbytes             # scales blocks
           + 2 * tm * G * 4                   # xg blocks
           + 2 * G * tn * 4                   # zeros blocks
           + (2 * tn * 4 if bias is not None else 0)
           + 2 * tm * tn * obytes             # output blocks
           + tm * tn * 4                      # accumulator scratch
           + rb * tn * dbytes                 # s_e temporary
           + rb * tn * 4                      # unpacked codes temporary
           + rb * tn * cbytes                 # dequantized weight temporary
           + tm * tn * 4)                     # dot result temporary
    vmem_limit = int(min(max(2 * est, 32 * 2 ** 20), _vmem_cap_bytes()))

    cost = pl.CostEstimate(
        flops=int(2 * M_pad * K * N),
        transcendentals=0,
        bytes_accessed=int(x3.size * cbytes + qweight.size * 4
                           + scales_q.size * dbytes + zeros_f.size * 4
                           + xg.size * 4 + M_pad * N * obytes))

    out = pl.pallas_call(
        kernel,
        out_shape=jax.ShapeDtypeStruct((M_pad, N), x_dtype),
        grid=grid,
        in_specs=in_specs,
        out_specs=pl.BlockSpec((tm, tn), lambda i, j, k: (i, j)),
        scratch_shapes=[pltpu.VMEM((tm, tn), jnp.float32)],
        compiler_params=pltpu.CompilerParams(
            dimension_semantics=("parallel", "parallel", "arbitrary"),
            vmem_limit_bytes=vmem_limit),
        cost_estimate=cost,
    )(*operands)

    if M_pad != M:
        out = out[:M]
    return out.reshape(lead + (N,))


# --------------------------- reference (plain JAX) ----------------------------

def reference_forward(x, qweight, scales, zeros, bias, *, bits, group_size,
                      compute_dtype=None):
    if compute_dtype is None:
        compute_dtype = (jnp.bfloat16
                         if (x.dtype == jnp.bfloat16 or x.dtype == jnp.float16)
                         else x.dtype)
    mask = (1 << bits) - 1
    vals = 32 // bits
    R, N = qweight.shape
    K = R * vals
    shifts = (bits * jnp.arange(vals, dtype=jnp.int32))[None, :, None]
    w = ((qweight[:, None, :] >> shifts) & mask).astype(jnp.float32)  # (R, vals, N)
    w = w.reshape(K // group_size, group_size, N)
    w = scales.astype(jnp.float32)[:, None, :] * w - zeros.astype(jnp.float32)[:, None, :]
    w = w.reshape(K, N).astype(compute_dtype)
    x2 = x.reshape(-1, K).astype(compute_dtype)
    out = jnp.dot(x2, w, preferred_element_type=jnp.float32)
    if bias is not None:
        out = out + bias.astype(jnp.float32)[None, :]
    return out.astype(x.dtype).reshape(x.shape[:-1] + (N,))


# ------------------------------ packing helper --------------------------------

def pack_intweight(intweight_u32, bits):
    """Pack (in_features, out_features) codes into int32 rows (KIVILinear.pack layout)."""
    vals = 32 // bits
    K, N = intweight_u32.shape
    assert K % vals == 0
    iw = intweight_u32.astype(np.uint32).reshape(K // vals, vals, N)
    qw = np.zeros((K // vals, N), dtype=np.uint32)
    for j in range(vals):
        qw |= iw[:, j, :] << np.uint32(bits * j)
    return qw.view(np.int32)


# ---------------------------------- main --------------------------------------

if __name__ == "__main__":
    key = jax.random.PRNGKey(0)

    configs = [
        # exercises K-tiling (2 k-steps), N-tiling (2 n-tiles) and the bias path
        dict(bits=4, group_size=64, in_features=2048, out_features=256,
             batch=2, seq=8, use_bias=True, tile_n=128, tile_r=128),
        # exercises 2-bit unpack (16 planes), default tiles, no bias
        dict(bits=2, group_size=128, in_features=1024, out_features=256,
             batch=2, seq=4, use_bias=False, tile_n=None, tile_r=None),
        # exercises single-group (G == 1) broadcast zero-correction path
        dict(bits=4, group_size=512, in_features=512, out_features=128,
             batch=1, seq=4, use_bias=False, tile_n=None, tile_r=None),
    ]

    for cfg in configs:
        bits, gs = cfg["bits"], cfg["group_size"]
        K, N = cfg["in_features"], cfg["out_features"]
        B, S = cfg["batch"], cfg["seq"]

        key, kx, kw, ks, kz, kb = jax.random.split(key, 6)
        x = jax.random.normal(kx, (B, S, K), dtype=jnp.float32).astype(jnp.bfloat16)

        intw = np.asarray(jax.random.randint(kw, (K, N), 0, 2 ** bits),
                          dtype=np.uint32)
        qweight = jnp.asarray(pack_intweight(intw, bits))

        G = K // gs
        scales = 0.01 + 0.05 * jax.random.uniform(ks, (G, N), dtype=jnp.float32)
        zp = jax.random.randint(kz, (G, N), 0, 2 ** bits).astype(jnp.float32)
        zeros = scales * zp                 # KIVILinear.pack stores scale * zero_point

        bias = (0.1 * jax.random.normal(kb, (N,), dtype=jnp.float32)
                if cfg["use_bias"] else None)

        out = kivi_linear_forward(x, qweight, scales, zeros, bias,
                                  bits=bits, group_size=gs,
                                  tile_n=cfg["tile_n"], tile_r=cfg["tile_r"])
        out = jax.block_until_ready(out)

        ref = reference_forward(x, qweight, scales, zeros, bias,
                                bits=bits, group_size=gs)
        ref = jax.block_until_ready(ref)

        assert out.shape == (B, S, N)
        assert out.dtype == x.dtype

        out_f = np.asarray(out, dtype=np.float32)
        ref_f = np.asarray(ref, dtype=np.float32)
        # Tolerances account for bf16 dequant (scale rounding) + reordered
        # zero-point accumulation vs. the bf16-weight reference; both are
        # O(bf16_eps * sqrt(K)) absolute.  Real bugs (wrong zero/scale/plane)
        # produce O(1)-O(10) errors and a large relative Frobenius error.
        np.testing.assert_allclose(out_f, ref_f, rtol=2e-2, atol=2.5e-1)
        rel = np.linalg.norm(out_f - ref_f) / max(np.linalg.norm(ref_f), 1e-6)
        assert rel < 1.5e-2, f"relative error too large: {rel}"

    print("KERNEL_OK")
</pallas_src>

<mosaic_0001>
module attributes {stable_mosaic.version = 11 : i64} {
  func.func @_kivi_kernel_bias(%arg0: i32, %arg1: i32, %arg2: i32, %arg3: memref<8x16x128xbf16, #tpu.memory_space<vmem>>, %arg4: memref<128x128xi32, #tpu.memory_space<vmem>>, %arg5: memref<16x128xbf16, #tpu.memory_space<vmem>>, %arg6: memref<16x32xf32, #tpu.memory_space<vmem>>, %arg7: memref<32x128xf32, #tpu.memory_space<vmem>>, %arg8: memref<1x128xf32, #tpu.memory_space<vmem>>, %arg9: memref<16x128xbf16, #tpu.memory_space<vmem>>, %arg10: memref<16x128xf32, #tpu.memory_space<vmem>>) attributes {dimension_semantics = [#tpu.dimension_semantics<parallel>, #tpu.dimension_semantics<parallel>, #tpu.dimension_semantics<arbitrary>], iteration_bounds = array<i64: 1, 2, 2>, scalar_prefetch = 0 : i64, scratch_operands = 1 : i64, tpu.core_type = #tpu.core_type<tc>, window_params = [{transform_indices = @transform_0, window_bounds = array<i64: 8, 16, 128>}, {transform_indices = @transform_1, window_bounds = array<i64: 128, 128>}, {transform_indices = @transform_2, window_bounds = array<i64: 16, 128>}, {transform_indices = @transform_3, window_bounds = array<i64: 16, 32>}, {transform_indices = @transform_4, window_bounds = array<i64: 32, 128>}, {transform_indices = @transform_5, window_bounds = array<i64: 1, 128>}, {transform_indices = @transform_6, window_bounds = array<i64: 16, 128>}]} {
    %c0_i32 = arith.constant 0 : i32
    %0 = arith.cmpi eq, %arg2, %c0_i32 : i32
    %1 = arith.extui %0 : i1 to i32
    %c0_i32_0 = arith.constant 0 : i32
    %2 = arith.cmpi ne, %1, %c0_i32_0 : i32
    scf.if %2 {
      %c0_68 = arith.constant 0 : index
      %c0_69 = arith.constant 0 : index
      %114 = vector.load %arg6[%c0_68, %c0_69] : memref<16x32xf32, #tpu.memory_space<vmem>>, vector<16x32xf32>
      %c0_70 = arith.constant 0 : index
      %c0_71 = arith.constant 0 : index
      %115 = vector.load %arg7[%c0_70, %c0_71] : memref<32x128xf32, #tpu.memory_space<vmem>>, vector<32x128xf32>
      %cst_72 = arith.constant dense<0.000000e+00> : vector<16x128xf32>
      %116 = tpu.matmul %114, %115, %cst_72 {dimension_numbers = #tpu.dot_dimension_numbers<[1], [0], [0], [1], [0, 0, 1, 1], [], []>} : vector<16x32xf32>, vector<32x128xf32>, vector<16x128xf32> -> vector<16x128xf32>
      %cst_73 = arith.constant 0.000000e+00 : f32
      %117 = vector.broadcast %cst_73 : f32 to vector<16x128xf32>
      %118 = arith.subf %117, %116 : vector<16x128xf32>
      %c0_74 = arith.constant 0 : index
      %c0_75 = arith.constant 0 : index
      %119 = vector.load %arg10[%c0_74, %c0_75] : memref<16x128xf32, #tpu.memory_space<vmem>>, vector<16x128xf32>
      tpu.vector_store %arg10[%c0_74, %c0_75], %118 {strides = array<i32>} : memref<16x128xf32, #tpu.memory_space<vmem>>, vector<16x128xf32>,
    } else {
    }
    %c0 = arith.constant 0 : index
    %c0_1 = arith.constant 0 : index
    %3 = vector.load %arg4[%c0, %c0_1] : memref<128x128xi32, #tpu.memory_space<vmem>>, vector<128x128xi32>
    %c0_2 = arith.constant 0 : index
    %c0_3 = arith.constant 0 : index
    %4 = vector.load %arg5[%c0_2, %c0_3] : memref<16x128xbf16, #tpu.memory_space<vmem>>, vector<16x128xbf16>
    %5 = vector.shape_cast %4 : vector<16x128xbf16> to vector<16x1x128xbf16>
    %6 = vector.shape_cast %5 : vector<16x1x128xbf16> to vector<16x1x128xbf16>
    %7 = vector.broadcast %6 : vector<16x1x128xbf16> to vector<16x8x128xbf16>
    %8 = vector.shape_cast %7 : vector<16x8x128xbf16> to vector<128x128xbf16>
    %c15_i32 = arith.constant 15 : i32
    %9 = vector.broadcast %c15_i32 : i32 to vector<128x128xi32>
    %10 = arith.andi %3, %9 : vector<128x128xi32>
    %11 = arith.sitofp %10 : vector<128x128xi32> to vector<128x128xf32>
    %12 = arith.truncf %11 : vector<128x128xf32> to vector<128x128xbf16>
    %13 = arith.mulf %12, %8 : vector<128x128xbf16>
    %c0_4 = arith.constant 0 : index
    %c0_5 = arith.constant 0 : index
    %14 = vector.load %arg10[%c0_4, %c0_5] : memref<16x128xf32, #tpu.memory_space<vmem>>, vector<16x128xf32>
    %c0_6 = arith.constant 0 : index
    %c0_7 = arith.constant 0 : index
    %c0_8 = arith.constant 0 : index
    %15 = vector.load %arg3[%c0_6, %c0_7, %c0_8] : memref<8x16x128xbf16, #tpu.memory_space<vmem>>, vector<1x16x128xbf16>
    %16 = vector.shape_cast %15 : vector<1x16x128xbf16> to vector<16x128xbf16>
    %cst = arith.constant dense<0.000000e+00> : vector<16x128xf32>
    %17 = tpu.matmul %16, %13, %cst {dimension_numbers = #tpu.dot_dimension_numbers<[1], [0], [0], [1], [0, 0, 1, 1], [], []>} : vector<16x128xbf16>, vector<128x128xbf16>, vector<16x128xf32> -> vector<16x128xf32>
    %18 = arith.addf %14, %17 : vector<16x128xf32>
    %c0_9 = arith.constant 0 : index
    %c0_10 = arith.constant 0 : index
    %19 = vector.load %arg10[%c0_9, %c0_10] : memref<16x128xf32, #tpu.memory_space<vmem>>, vector<16x128xf32>
    tpu.vector_store %arg10[%c0_9, %c0_10], %18 {strides = array<i32>} : memref<16x128xf32, #tpu.memory_space<vmem>>, vector<16x128xf32>,
    %c4_i32 = arith.constant 4 : i32
    %20 = vector.broadcast %c4_i32 : i32 to vector<128x128xi32>
    %21 = arith.shrsi %3, %20 : vector<128x128xi32>
    %c15_i32_11 = arith.constant 15 : i32
    %22 = vector.broadcast %c15_i32_11 : i32 to vector<128x128xi32>
    %23 = arith.andi %21, %22 : vector<128x128xi32>
    %24 = arith.sitofp %23 : vector<128x128xi32> to vector<128x128xf32>
    %25 = arith.truncf %24 : vector<128x128xf32> to vector<128x128xbf16>
    %26 = arith.mulf %25, %8 : vector<128x128xbf16>
    %c0_12 = arith.constant 0 : index
    %c0_13 = arith.constant 0 : index
    %27 = vector.load %arg10[%c0_12, %c0_13] : memref<16x128xf32, #tpu.memory_space<vmem>>, vector<16x128xf32>
    %c1 = arith.constant 1 : index
    %c0_14 = arith.constant 0 : index
    %c0_15 = arith.constant 0 : index
    %28 = vector.load %arg3[%c1, %c0_14, %c0_15] : memref<8x16x128xbf16, #tpu.memory_space<vmem>>, vector<1x16x128xbf16>
    %29 = vector.shape_cast %28 : vector<1x16x128xbf16> to vector<16x128xbf16>
    %cst_16 = arith.constant dense<0.000000e+00> : vector<16x128xf32>
    %30 = tpu.matmul %29, %26, %cst_16 {dimension_numbers = #tpu.dot_dimension_numbers<[1], [0], [0], [1], [0, 0, 1, 1], [], []>} : vector<16x128xbf16>, vector<128x128xbf16>, vector<16x128xf32> -> vector<16x128xf32>
    %31 = arith.addf %27, %30 : vector<16x128xf32>
    %c0_17 = arith.constant 0 : index
    %c0_18 = arith.constant 0 : index
    %32 = vector.load %arg10[%c0_17, %c0_18] : memref<16x128xf32, #tpu.memory_space<vmem>>, vector<16x128xf32>
    tpu.vector_store %arg10[%c0_17, %c0_18], %31 {strides = array<i32>} : memref<16x128xf32, #tpu.memory_space<vmem>>, vector<16x128xf32>,
    %c8_i32 = arith.constant 8 : i32
    %33 = vector.broadcast %c8_i32 : i32 to vector<128x128xi32>
    %34 = arith.shrsi %3, %33 : vector<128x128xi32>
    %c15_i32_19 = arith.constant 15 : i32
    %35 = vector.broadcast %c15_i32_19 : i32 to vector<128x128xi32>
    %36 = arith.andi %34, %35 : vector<128x128xi32>
    %37 = arith.sitofp %36 : vector<128x128xi32> to vector<128x128xf32>
    %38 = arith.truncf %37 : vector<128x128xf32> to vector<128x128xbf16>
    %39 = arith.mulf %38, %8 : vector<128x128xbf16>
    %c0_20 = arith.constant 0 : index
    %c0_21 = arith.constant 0 : index
    %40 = vector.load %arg10[%c0_20, %c0_21] : memref<16x128xf32, #tpu.memory_space<vmem>>, vector<16x128xf32>
    %c2 = arith.constant 2 : index
    %c0_22 = arith.constant 0 : index
    %c0_23 = arith.constant 0 : index
    %41 = vector.load %arg3[%c2, %c0_22, %c0_23] : memref<8x16x128xbf16, #tpu.memory_space<vmem>>, vector<1x16x128xbf16>
    %42 = vector.shape_cast %41 : vector<1x16x128xbf16> to vector<16x128xbf16>
    %cst_24 = arith.constant dense<0.000000e+00> : vector<16x128xf32>
    %43 = tpu.matmul %42, %39, %cst_24 {dimension_numbers = #tpu.dot_dimension_numbers<[1], [0], [0], [1], [0, 0, 1, 1], [], []>} : vector<16x128xbf16>, vector<128x128xbf16>, vector<16x128xf32> -> vector<16x128xf32>
    %44 = arith.addf %40, %43 : vector<16x128xf32>
    %c0_25 = arith.constant 0 : index
    %c0_26 = arith.constant 0 : index
    %45 = vector.load %arg10[%c0_25, %c0_26] : memref<16x128xf32, #tpu.memory_space<vmem>>, vector<16x128xf32>
    tpu.vector_store %arg10[%c0_25, %c0_26], %44 {strides = array<i32>} : memref<16x128xf32, #tpu.memory_space<vmem>>, vector<16x128xf32>,
    %c12_i32 = arith.constant 12 : i32
    %46 = vector.broadcast %c12_i32 : i32 to vector<128x128xi32>
    %47 = arith.shrsi %3, %46 : vector<128x128xi32>
    %c15_i32_27 = arith.constant 15 : i32
    %48 = vector.broadcast %c15_i32_27 : i32 to vector<128x128xi32>
    %49 = arith.andi %47, %48 : vector<128x128xi32>
    %50 = arith.sitofp %49 : vector<128x128xi32> to vector<128x128xf32>
    %51 = arith.truncf %50 : vector<128x128xf32> to vector<128x128xbf16>
    %52 = arith.mulf %51, %8 : vector<128x128xbf16>
    %c0_28 = arith.constant 0 : index
    %c0_29 = arith.constant 0 : index
    %53 = vector.load %arg10[%c0_28, %c0_29] : memref<16x128xf32, #tpu.memory_space<vmem>>, vector<16x128xf32>
    %c3 = arith.constant 3 : index
    %c0_30 = arith.constant 0 : index
    %c0_31 = arith.constant 0 : index
    %54 = vector.load %arg3[%c3, %c0_30, %c0_31] : memref<8x16x128xbf16, #tpu.memory_space<vmem>>, vector<1x16x128xbf16>
    %55 = vector.shape_cast %54 : vector<1x16x128xbf16> to vector<16x128xbf16>
    %cst_32 = arith.constant dense<0.000000e+00> : vector<16x128xf32>
    %56 = tpu.matmul %55, %52, %cst_32 {dimension_numbers = #tpu.dot_dimension_numbers<[1], [0], [0], [1], [0, 0, 1, 1], [], []>} : vector<16x128xbf16>, vector<128x128xbf16>, vector<16x128xf32> -> vector<16x128xf32>
    %57 = arith.addf %53, %56 : vector<16x128xf32>
    %c0_33 = arith.constant 0 : index
    %c0_34 = arith.constant 0 : index
    %58 = vector.load %arg10[%c0_33, %c0_34] : memref<16x128xf32, #tpu.memory_space<vmem>>, vector<16x128xf32>
    tpu.vector_store %arg10[%c0_33, %c0_34], %57 {strides = array<i32>} : memref<16x128xf32, #tpu.memory_space<vmem>>, vector<16x128xf32>,
    %c16_i32 = arith.constant 16 : i32
    %59 = vector.broadcast %c16_i32 : i32 to vector<128x128xi32>
    %60 = arith.shrsi %3, %59 : vector<128x128xi32>
    %c15_i32_35 = arith.constant 15 : i32
    %61 = vector.broadcast %c15_i32_35 : i32 to vector<128x128xi32>
    %62 = arith.andi %60, %61 : vector<128x128xi32>
    %63 = arith.sitofp %62 : vector<128x128xi32> to vector<128x128xf32>
    %64 = arith.truncf %63 : vector<128x128xf32> to vector<128x128xbf16>
    %65 = arith.mulf %64, %8 : vector<128x128xbf16>
    %c0_36 = arith.constant 0 : index
    %c0_37 = arith.constant 0 : index
    %66 = vector.load %arg10[%c0_36, %c0_37] : memref<16x128xf32, #tpu.memory_space<vmem>>, vector<16x128xf32>
    %c4 = arith.constant 4 : index
    %c0_38 = arith.constant 0 : index
    %c0_39 = arith.constant 0 : index
    %67 = vector.load %arg3[%c4, %c0_38, %c0_39] : memref<8x16x128xbf16, #tpu.memory_space<vmem>>, vector<1x16x128xbf16>
    %68 = vector.shape_cast %67 : vector<1x16x128xbf16> to vector<16x128xbf16>
    %cst_40 = arith.constant dense<0.000000e+00> : vector<16x128xf32>
    %69 = tpu.matmul %68, %65, %cst_40 {dimension_numbers = #tpu.dot_dimension_numbers<[1], [0], [0], [1], [0, 0, 1, 1], [], []>} : vector<16x128xbf16>, vector<128x128xbf16>, vector<16x128xf32> -> vector<16x128xf32>
    %70 = arith.addf %66, %69 : vector<16x128xf32>
    %c0_41 = arith.constant 0 : index
    %c0_42 = arith.constant 0 : index
    %71 = vector.load %arg10[%c0_41, %c0_42] : memref<16x128xf32, #tpu.memory_space<vmem>>, vector<16x128xf32>
    tpu.vector_store %arg10[%c0_41, %c0_42], %70 {strides = array<i32>} : memref<16x128xf32, #tpu.memory_space<vmem>>, vector<16x128xf32>,
    %c20_i32 = arith.constant 20 : i32
    %72 = vector.broadcast %c20_i32 : i32 to vector<128x128xi32>
    %73 = arith.shrsi %3, %72 : vector<128x128xi32>
    %c15_i32_43 = arith.constant 15 : i32
    %74 = vector.broadcast %c15_i32_43 : i32 to vector<128x128xi32>
    %75 = arith.andi %73, %74 : vector<128x128xi32>
    %76 = arith.sitofp %75 : vector<128x128xi32> to vector<128x128xf32>
    %77 = arith.truncf %76 : vector<128x128xf32> to vector<128x128xbf16>
    %78 = arith.mulf %77, %8 : vector<128x128xbf16>
    %c0_44 = arith.constant 0 : index
    %c0_45 = arith.constant 0 : index
    %79 = vector.load %arg10[%c0_44, %c0_45] : memref<16x128xf32, #tpu.memory_space<vmem>>, vector<16x128xf32>
    %c5 = arith.constant 5 : index
    %c0_46 = arith.constant 0 : index
    %c0_47 = arith.constant 0 : index
    %80 = vector.load %arg3[%c5, %c0_46, %c0_47] : memref<8x16x128xbf16, #tpu.memory_space<vmem>>, vector<1x16x128xbf16>
    %81 = vector.shape_cast %80 : vector<1x16x128xbf16> to vector<16x128xbf16>
    %cst_48 = arith.constant dense<0.000000e+00> : vector<16x128xf32>
    %82 = tpu.matmul %81, %78, %cst_48 {dimension_numbers = #tpu.dot_dimension_numbers<[1], [0], [0], [1], [0, 0, 1, 1], [], []>} : vector<16x128xbf16>, vector<128x128xbf16>, vector<16x128xf32> -> vector<16x128xf32>
    %83 = arith.addf %79, %82 : vector<16x128xf32>
    %c0_49 = arith.constant 0 : index
    %c0_50 = arith.constant 0 : index
    %84 = vector.load %arg10[%c0_49, %c0_50] : memref<16x128xf32, #tpu.memory_space<vmem>>, vector<16x128xf32>
    tpu.vector_store %arg10[%c0_49, %c0_50], %83 {strides = array<i32>} : memref<16x128xf32, #tpu.memory_space<vmem>>, vector<16x128xf32>,
    %c24_i32 = arith.constant 24 : i32
    %85 = vector.broadcast %c24_i32 : i32 to vector<128x128xi32>
    %86 = arith.shrsi %3, %85 : vector<128x128xi32>
    %c15_i32_51 = arith.constant 15 : i32
    %87 = vector.broadcast %c15_i32_51 : i32 to vector<128x128xi32>
    %88 = arith.andi %86, %87 : vector<128x128xi32>
    %89 = arith.sitofp %88 : vector<128x128xi32> to vector<128x128xf32>
    %90 = arith.truncf %89 : vector<128x128xf32> to vector<128x128xbf16>
    %91 = arith.mulf %90, %8 : vector<128x128xbf16>
    %c0_52 = arith.constant 0 : index
    %c0_53 = arith.constant 0 : index
    %92 = vector.load %arg10[%c0_52, %c0_53] : memref<16x128xf32, #tpu.memory_space<vmem>>, vector<16x128xf32>
    %c6 = arith.constant 6 : index
    %c0_54 = arith.constant 0 : index
    %c0_55 = arith.constant 0 : index
    %93 = vector.load %arg3[%c6, %c0_54, %c0_55] : memref<8x16x128xbf16, #tpu.memory_space<vmem>>, vector<1x16x128xbf16>
    %94 = vector.shape_cast %93 : vector<1x16x128xbf16> to vector<16x128xbf16>
    %cst_56 = arith.constant dense<0.000000e+00> : vector<16x128xf32>
    %95 = tpu.matmul %94, %91, %cst_56 {dimension_numbers = #tpu.dot_dimension_numbers<[1], [0], [0], [1], [0, 0, 1, 1], [], []>} : vector<16x128xbf16>, vector<128x128xbf16>, vector<16x128xf32> -> vector<16x128xf32>
    %96 = arith.addf %92, %95 : vector<16x128xf32>
    %c0_57 = arith.constant 0 : index
    %c0_58 = arith.constant 0 : index
    %97 = vector.load %arg10[%c0_57, %c0_58] : memref<16x128xf32, #tpu.memory_space<vmem>>, vector<16x128xf32>
    tpu.vector_store %arg10[%c0_57, %c0_58], %96 {strides = array<i32>} : memref<16x128xf32, #tpu.memory_space<vmem>>, vector<16x128xf32>,
    %c28_i32 = arith.constant 28 : i32
    %98 = vector.broadcast %c28_i32 : i32 to vector<128x128xi32>
    %99 = arith.shrsi %3, %98 : vector<128x128xi32>
    %c15_i32_59 = arith.constant 15 : i32
    %100 = vector.broadcast %c15_i32_59 : i32 to vector<128x128xi32>
    %101 = arith.andi %99, %100 : vector<128x128xi32>
    %102 = arith.sitofp %101 : vector<128x128xi32> to vector<128x128xf32>
    %103 = arith.truncf %102 : vector<128x128xf32> to vector<128x128xbf16>
    %104 = arith.mulf %103, %8 : vector<128x128xbf16>
    %c0_60 = arith.constant 0 : index
    %c0_61 = arith.constant 0 : index
    %105 = vector.load %arg10[%c0_60, %c0_61] : memref<16x128xf32, #tpu.memory_space<vmem>>, vector<16x128xf32>
    %c7 = arith.constant 7 : index
    %c0_62 = arith.constant 0 : index
    %c0_63 = arith.constant 0 : index
    %106 = vector.load %arg3[%c7, %c0_62, %c0_63] : memref<8x16x128xbf16, #tpu.memory_space<vmem>>, vector<1x16x128xbf16>
    %107 = vector.shape_cast %106 : vector<1x16x128xbf16> to vector<16x128xbf16>
    %cst_64 = arith.constant dense<0.000000e+00> : vector<16x128xf32>
    %108 = tpu.matmul %107, %104, %cst_64 {dimension_numbers = #tpu.dot_dimension_numbers<[1], [0], [0], [1], [0, 0, 1, 1], [], []>} : vector<16x128xbf16>, vector<128x128xbf16>, vector<16x128xf32> -> vector<16x128xf32>
    %109 = arith.addf %105, %108 : vector<16x128xf32>
    %c0_65 = arith.constant 0 : index
    %c0_66 = arith.constant 0 : index
    %110 = vector.load %arg10[%c0_65, %c0_66] : memref<16x128xf32, #tpu.memory_space<vmem>>, vector<16x128xf32>
    tpu.vector_store %arg10[%c0_65, %c0_66], %109 {strides = array<i32>} : memref<16x128xf32, #tpu.memory_space<vmem>>, vector<16x128xf32>,
    %c1_i32 = arith.constant 1 : i32
    %111 = arith.cmpi eq, %arg2, %c1_i32 : i32
    %112 = arith.extui %111 : i1 to i32
    %c0_i32_67 = arith.constant 0 : i32
    %113 = arith.cmpi ne, %112, %c0_i32_67 : i32
    scf.if %113 {
      %c0_68 = arith.constant 0 : index
      %c0_69 = arith.constant 0 : index
      %114 = vector.load %arg10[%c0_68, %c0_69] : memref<16x128xf32, #tpu.memory_space<vmem>>, vector<16x128xf32>
      %c0_70 = arith.constant 0 : index
      %c0_71 = arith.constant 0 : index
      %115 = vector.load %arg8[%c0_70, %c0_71] : memref<1x128xf32, #tpu.memory_space<vmem>>, vector<1x128xf32>
      %116 = vector.broadcast %115 : vector<1x128xf32> to vector<16x128xf32>
      %117 = arith.addf %114, %116 : vector<16x128xf32>
      %118 = arith.truncf %117 : vector<16x128xf32> to vector<16x128xbf16>
      %c0_72 = arith.constant 0 : index
      %c0_73 = arith.constant 0 : index
      %119 = vector.load %arg9[%c0_72, %c0_73] : memref<16x128xbf16, #tpu.memory_space<vmem>>, vector<16x128xbf16>
      tpu.vector_store %arg9[%c0_72, %c0_73], %118 {strides = array<i32>} : memref<16x128xbf16, #tpu.memory_space<vmem>>, vector<16x128xbf16>,
    } else {
    }
    return
  }
  func.func @transform_0(%arg0: i32, %arg1: i32, %arg2: i32) -> (i32, i32, i32) {
    %c0_i32 = arith.constant 0 : i32
    %c0_i32_0 = arith.constant 0 : i32
    return %c0_i32, %arg0, %arg2 : i32, i32, i32
  }
  func.func @transform_1(%arg0: i32, %arg1: i32, %arg2: i32) -> (i32, i32) {
    %c0_i32 = arith.constant 0 : i32
    return %arg2, %arg1 : i32, i32
  }
  func.func @transform_2(%arg0: i32, %arg1: i32, %arg2: i32) -> (i32, i32) {
    %c0_i32 = arith.constant 0 : i32
    return %arg2, %arg1 : i32, i32
  }
  func.func @transform_3(%arg0: i32, %arg1: i32, %arg2: i32) -> (i32, i32) {
    %c0_i32 = arith.constant 0 : i32
    %c0_i32_0 = arith.constant 0 : i32
    return %arg0, %c0_i32 : i32, i32
  }
  func.func @transform_4(%arg0: i32, %arg1: i32, %arg2: i32) -> (i32, i32) {
    %c0_i32 = arith.constant 0 : i32
    %c0_i32_0 = arith.constant 0 : i32
    return %c0_i32, %arg1 : i32, i32
  }
  func.func @transform_5(%arg0: i32, %arg1: i32, %arg2: i32) -> (i32, i32) {
    %c0_i32 = arith.constant 0 : i32
    %c0_i32_0 = arith.constant 0 : i32
    return %c0_i32, %arg1 : i32, i32
  }
  func.func @transform_6(%arg0: i32, %arg1: i32, %arg2: i32) -> (i32, i32) {
    %c0_i32 = arith.constant 0 : i32
    return %arg0, %arg1 : i32, i32
  }
}

</mosaic_0001>

<bundles_post_ra>
// kernel: tpu_custom_call.1
= control target key start
LH: loop header
LB: loop body
LE: loop exit
PB: predicated region body
PF: predicated region fallthrough
CT: control target
= control target key end

     0   :  { %s3921_s0 = inlined_call_operand.hbm [shape: bf16[8,16,256], index: 0, kind: input, shape index: {}]   ;;  %s3922_s1 = inlined_call_operand.hbm [shape: s32[256,256], index: 1, kind: input, shape index: {}]   ;;  %s3923_s2 = inlined_call_operand.hbm [shape: bf16[32,256], index: 2, kind: input, shape index: {}]   ;;  %s3924_s3 = inlined_call_operand.hbm [shape: f32[16,32], index: 3, kind: input, shape index: {}]   ;;  %s3925_s4 = inlined_call_operand.hbm [shape: f32[32,256], index: 4, kind: input, shape index: {}]   ;;  %s3926_s5 = inlined_call_operand.vmem [shape: f32[1,256], index: 5, kind: input, shape index: {}]   ;;  %s3927_s6 = inlined_call_operand.hbm [shape: bf16[16,256], index: 6, kind: output, shape index: {}]  }
   0x1   :  { %3960 = sst [smem:[#allocation32_spill]] %s3921_s0 }
   0x2   :  { %3961 = sst [smem:[#allocation33_spill]] %s3922_s1 }
   0x3   :  { %3962 = sst [smem:[#allocation34_spill]] %s3926_s5 }
   0x4   :  { %3963 = sst [smem:[#allocation35_spill]] %s3927_s6 }
   0x5   :  { %11 = vsyncpa [#allocation4], 0 }
   0x6   :  { %13 = vsyncpa [#allocation4 + $0x1], 0 }
   0x7   :  { %14 = vsyncpa [#allocation7], 0 }
   0x8   :  { %16 = vsyncpa [#allocation7 + $0x1], 0 }
   0x9   :  { %17 = vsyncpa [#allocation10], 0 }
   0xa   :  { %18 = vsyncpa [#allocation5], 0 }
   0xb   :  { %20 = vsyncpa [#allocation5 + $0x1], 0  ;;  %s2979_s21 = smov 0   ;;  %s2981_s22 = smov 0  }
   0xc   :  { %s2983_s23 = smov 0   ;;  %s2985_s24 = smov 0  }
   0xd   :  { %s2987_s25 = smov 0   ;;  %s2989_s26 = smov 0  }
   0xe   :  { %s2991_s27 = smov 0   ;;  %s2993_s28 = smov 0  }
   0xf   :  { %s2995_s29 = smov 0   ;;  %s2997_s30 = smov 0  }
  0x10   :  { %s2999_s7 = smov 0   ;;  %s3001_s8 = smov 0  }
  0x11   :  { %s3003_s9 = smov 0   ;;  %s3005_s10 = smov 0  }
  0x12 LB: > { %3964 = sst [smem:[#allocation18_spill]] %s2873_s21  ;;  %s38_s11 = sadd.s32 1, %s2917_s8  ;;  %s2925_s10 = sphi %s3005_s10, %s26_s10   ;;  %s2921_s9 = sphi %s3003_s9, %s4046_s9   ;;  %s2917_s8 = sphi %s3001_s8, %s4034_s8   ;;  %s2913_s7 = sphi %s2999_s7, %s4045_s7   ;;  %s2909_s30 = sphi %s2997_s30, %s4033_s30   ;;  %s2905_s29 = sphi %s2995_s29, %s4032_s29   ;;  %s2901_s28 = sphi %s2993_s28, %s4044_s28   ;;  %s2897_s27 = sphi %s2991_s27, %s4043_s27   ;;  %s2893_s26 = sphi %s2989_s26, %s4042_s26   ;;  %s2889_s25 = sphi %s2987_s25, %s4041_s25   ;;  %s2885_s24 = sphi %s2985_s24, %s4040_s24   ;;  %s2881_s23 = sphi %s2983_s23, %s4039_s23   ;;  %s2877_s22 = sphi %s2981_s22, %s4038_s22   ;;  %s2873_s21 = sphi %s2979_s21, %s4037_s21  }
  0x13   : > { %3965 = sst [smem:[#allocation19_spill]] %s2893_s26  ;;  %s54_s12 = sadd.s32 1, %s2905_s29 }
  0x14   : > { %3966 = sst [smem:[#allocation20_spill]] %s2905_s29  ;;  %p3051_p0 = scmp.ge.s32.totalorder %s38_s11, 2 }
  0x15   : > { %3967 = sst [smem:[#allocation21_spill]] %s2909_s30  ;;  %p61_p1 = scmp.ne.s32.totalorder %s2905_s29, %s2901_s28 }
  0x16   : > { %3968 = sst [smem:[#allocation22_spill]] %s2913_s7  ;;  %p3933_p2 = scmp.eq.s32.totalorder %s2925_s10, 0 }
  0x17   : > { %3969 = sst [smem:[#allocation23_spill]] %s2917_s8  ;;  %s4048_s11 = smov (%p3051_p0, %s38_s11), 0 }
  0x18   : > { %3971 = sst [smem:[#allocation24_spill]] %s4048_s11  ;;  %p3066_p4 = por %p3933_p2, %p61_p1 }
  0x19   : > { %s3072_s15 = ssub.s32 %s2917_s8, %s4048_s11  ;;  %p3932_p6 = scmp.lt.s32.totalorder %s2925_s10, 4 }
  0x1a   : > { %p52_p5 = scmp.eq.s32.totalorder %s3072_s15, 0  ;;  %s3931_s16 = sand.u32 1, %s2925_s10  }
  0x1b   : > { %s271_s17 = sand.u32 1, %s2905_s29   ;;  %s2048_s20 = sshll.u32 %s2917_s8, 6 }
  0x1c   : > { %s3079_s18 = scalar_select %p52_p5, %s2905_s29, %s54_s12  }
  0x1d   : > { %s2047_s19 = sshll.u32 %s271_s17, 6  ;;  %s3974_s0 = sld [smem:[#allocation32_spill]] }
  0x1e   : > { %3973 = sst [smem:[#allocation25_spill]] %s3079_s18  ;;  %s273_s11 = scalar_lea.vmem [#allocation3], %s2047_s19 }
  0x1f   : > { %s282_s7 = sshll.u32 %s273_s11, 4  ;;  %p3093_p7 = pnand %p3932_p6, %p3066_p4  ;;  %s3087_s7 = int_to_ptr.vmem [resolvable:$true] %s282_s7 }
  0x20   : > { %s3099_s6 = scalar_lea.sflag [#allocation4], %s3931_s16 }
  0x21   : > { %3976 = sst [smem:[#allocation26_spill]] %s3099_s6  ;;  %p2621_p9 = pneg %p3093_p7 }
  0x23   : > { %s3085_s5 = scalar_lea.hbm %s3974_s0, %s2048_s20  ;;  %s2624_s17 = scalar_lea.hbm %s3974_s0, 2048 }
  0x24   : > { %s2619_s30 = scalar_lea.hbm %s3085_s5, 1024  ;;  %p2625_p12 = scmp.lt.u32.totalorder %s3085_s5, %s3974_s0 }
  0x25   : > { %p2620_p8 = scmp.ne.s32.totalorder %s3085_s5, %s2619_s30  ;;  %p2626_p13 = scmp.lt.u32.totalorder %s2624_s17, %s2619_s30 }
  0x26   : > { %p2628_p4 = scmp.lt.u32.totalorder %s2619_s30, %s3085_s5 }
  0x27   : > { %p2622_p10 = pnand %p2621_p9, %p2620_p8  ;;  %p2627_p1 = por %p2626_p13, %p2625_p12 }
  0x29   : > { %p2623_p11 = pneg %p2622_p10  ;;  %p2629_p5 = por %p2628_p4, %p2627_p1 }
  0x2b   : > { %p2630_p3 = pnand %p2629_p5, %p2623_p11 }
  0x2d   : > { %2633 = shalt.err (!%p2630_p3)
}
  0x2e   : > { %s2634_s16 = scalar_lea.vmem %s3087_s7, 1024  ;;  %s2927_s11 = smov [#allocation3]  }
  0x2f   : > { %p2635_p8 = scmp.ne.s32.totalorder %s3087_s7, %s2634_s16  ;;  %s2639_s14 = sshll.u32 %s2927_s11, 4  ;;  %s2640_s14 = int_to_ptr.vmem [resolvable:$false] %s2639_s14 }
  0x30   : > { %s2641_s19 = scalar_lea.vmem %s2640_s14, 2048  ;;  %p2642_p2 = scmp.lt.s32.totalorder %s3087_s7, %s2640_s14 }
  0x31   : > { %p2637_p10 = pnand %p2635_p8, %p2621_p9  ;;  %p2643_p12 = scmp.lt.s32.totalorder %s2641_s19, %s2634_s16 }
  0x33   : > { %p2638_p6 = pneg %p2637_p10  ;;  %p2644_p13 = por %p2643_p12, %p2642_p2 }
  0x35   : > { %p2645_p1 = pnand %p2644_p13, %p2638_p6 }
  0x37   : > { %2648 = shalt.err (!%p2645_p1)
}
  0x38   : > { %s3936_s30 = smov 128   ;;  %s3934_s16 = smov 64  }
  0x39   : > { %s3935_s17 = smov 4   ;;  %s41_s20 = sadd.s32 1, %s2921_s9 }
  0x3a   : > { %2456 = dma.hbm_to_vmem [thread:$0]  (!%p3093_p7), %s3085_s5, 1024, %s3087_s7, %s3099_s6, %s3936_s30, %s3934_s16, %s3935_s17  }
  0x3b   : > { %s4050_s20 = smov (!%p3051_p0, %s41_s20), %s2921_s9  ;;  %s82_s11 = sadd.s32 1, %s2893_s26 }
  0x3c   : > { %p89_p2 = scmp.ne.s32.totalorder %s2893_s26, %s2889_s25  ;;  %p43_p3 = scmp.ge.s32.totalorder %s4050_s20, 2 }
  0x3d   : > { %p95_p6 = scmp.ne.s32.totalorder %s2889_s25, %s2885_s24  ;;  %p3977_p9 = scmp.eq.s32.totalorder %s2925_s10, 0 }
  0x3e   : > { %s4052_s20 = smov (%p43_p3, %s4050_s20), 0  ;;  %s294_s5 = sand.u32 1, %s2893_s26  }
  0x3f   : > { %p3141_p11 = por %p89_p2, %p3977_p9  ;;  %3979 = sst [smem:[#allocation27_spill]] %s4052_s20 }
  0x40   : > { %s3150_s7 = ssub.s32 %s2921_s9, %s4052_s20  ;;  %s2049_s13 = sshll.u32 %s294_s5, 7 }
  0x41   : > { %s79_s12 = sor.u32 %s3150_s7, %s3072_s15  ;;  %s2133_s19 = sshll.u32 %s2917_s8, 5 }
  0x42   : > { %p80_p7 = scmp.eq.s32.totalorder %s79_s12, 0  ;;  %s296_s16 = scalar_lea.vmem [#allocation6], %s2049_s13 }
  0x43   : > { %s305_s17 = sshll.u32 %s296_s16, 4  ;;  %s302_s0 = sadd.s32 %s2921_s9, %s2133_s19  ;;  %s3160_s17 = int_to_ptr.vmem [resolvable:$true] %s305_s17 }
  0x44   : > { %s3157_s30 = scalar_select %p80_p7, %s2893_s26, %s82_s11  }
  0x45   : > { %s2052_s18 = sshll.u32 %s302_s0, 7  ;;  %p3981_p4 = scmp.lt.s32.totalorder %s2925_s10, 4 }
  0x46   : > { %3980 = sst [smem:[#allocation28_spill]] %s3157_s30  ;;  %s3983_s1 = sld [smem:[#allocation33_spill]] }
  0x47   : > { %p3166_p5 = pnand %p3981_p4, %p3141_p11  ;;  %s3175_s16 = sshll.u32 %s294_s5, 3 }
  0x48   : > { %s3984_s0 = sand.u32 1, %s2925_s10  }
  0x49   : > { %s3982_s20 = scalar_select %p3166_p5, 1, 0 }
  0x4a   : > { %s3179_s11 = scalar_lea.sflag [#allocation7], %s3984_s0  ;;  %p3953_p10 = pneg %p3166_p5 }
  0x4c   : > { %s3173_s15 = scalar_lea.hbm %s3983_s1, %s2052_s18  ;;  %s2654_s6 = scalar_lea.hbm %s3983_s1, 8192 }
  0x4d   : > { %s2649_s14 = scalar_lea.hbm %s3173_s15, 2048  ;;  %p2655_p1 = scmp.lt.u32.totalorder %s3173_s15, %s3983_s1 }
  0x4e   : > { %p2650_p8 = scmp.ne.s32.totalorder %s3173_s15, %s2649_s14  ;;  %p2656_p2 = scmp.lt.u32.totalorder %s2654_s6, %s2649_s14 }
  0x4f   : > { %p2658_p9 = scmp.lt.u32.totalorder %s2649_s14, %s3173_s15 }
  0x50   : > { %p2652_p12 = pnand %p3953_p10, %p2650_p8  ;;  %p2657_p3 = por %p2656_p2, %p2655_p1 }
  0x52   : > { %p2653_p13 = pneg %p2652_p12  ;;  %p2659_p11 = por %p2658_p9, %p2657_p3 }
  0x54   : > { %p2660_p7 = pnand %p2659_p11, %p2653_p13 }
  0x56   : > { %2663 = shalt.err (!%p2660_p7)
}
  0x57   : > { %s2664_s5 = scalar_lea.vmem %s3160_s17, 2048  ;;  %s2931_s19 = smov [#allocation6]  }
  0x58   : > { %p2665_p4 = scmp.ne.s32.totalorder %s3160_s17, %s2664_s5  ;;  %s2669_s0 = sshll.u32 %s2931_s19, 4  ;;  %s2670_s0 = int_to_ptr.vmem [resolvable:$false] %s2669_s0 }
  0x59   : > { %s2671_s29 = scalar_lea.vmem %s2670_s0, 4096  ;;  %p2672_p0 = scmp.lt.s32.totalorder %s3160_s17, %s2670_s0 }
  0x5a   : > { %p2667_p8 = pnand %p2665_p4, %p3953_p10  ;;  %p2673_p1 = scmp.lt.s32.totalorder %s2671_s29, %s2664_s5 }
  0x5c   : > { %p2668_p12 = pneg %p2667_p8  ;;  %p2674_p2 = por %p2673_p1, %p2672_p0 }
  0x5e   : > { %p2675_p3 = pnand %p2674_p2, %p2668_p12 }
  0x60   : > { %2678 = shalt.err (!%p2675_p3)
}
  0x61   : > { %s3941_s14 = smov 256   ;;  %s3942_s18 = smov 8  }
  0x62   : > { %s3985_s6 = smov 128   ;;  %s319_s13 = scalar_lea.vmem [#allocation8], %s3175_s16 }
  0x63   : > { %2459 = dma.hbm_to_vmem [thread:$0]  (!%p3166_p5), %s3173_s15, 2048, %s3160_s17, %s3179_s11, %s3941_s14, %s3985_s6, %s3942_s18  }
  0x64   : > { %s328_s12 = sshll.u32 %s319_s13, 4  ;;  %s3214_s5 = sadd.s32 4294967295, %s2925_s10   ;;  %s3211_s12 = int_to_ptr.vmem [resolvable:$true] %s328_s12 }
  0x65   : > { %s2043_s19 = sadd.s32 4294967294, %s2925_s10   ;;  %p3952_p0 = scmp.eq.s32.totalorder %s3214_s5, 0 }
  0x66   : > { %p175_p13 = scmp.ne.s32.totalorder %s2877_s22, %s2873_s21  ;;  %p3986_p11 = scmp.ne.s32.totalorder %s2901_s28, %s2897_s27 }
  0x67   : > { %p3235_p4 = por %p95_p6, %p3952_p0  ;;  %p233_p12 = scmp.eq.s32.totalorder %s2043_s19, 3 }
  0x68   : > { %p3226_p7 = por %p3952_p0, %p3986_p11  ;;  %p3241_p8 = por %p175_p13, %p3952_p0 }
  0x69   : > { %s3988_s15 = scalar_select %p3235_p4, 1, 0 }
  0x6a   : > { %s3987_s17 = scalar_select %p3226_p7, 1, 0 }
  0x6b   : > { %3989 = sst [smem:[#allocation29_spill]] %s3988_s15  ;;  %p2044_p1 = scmp.ge.s32.totalorder %s2925_s10, 1 }
  0x6c   : > { %s3990_s16 = scalar_select %p3241_p8, 1, 0 }
  0x6d   : > { %p240_p2 = scmp.lt.s32.totalorder %s2925_s10, 5  ;;  %p3247_p3 = por %p233_p12, %p175_p13 }
  0x6e   : > { %3991 = sst [smem:[#allocation30_spill]] %s3990_s16  ;;  %s2934_s24 = smov [#allocation9]  }
  0x6f   : > { %s3992_s27 = scalar_select %p3247_p3, 1, 0 }
  0x70   : > { %p3251_p11 = pnand %p2044_p1, %p240_p2  ;;  %s255_s29 = sshll.u32 %s2934_s24, 4  ;;  %s256_s29 = int_to_ptr.vmem [resolvable:$true] %s255_s29 }
  0x71   : > { %3993 = sst [smem:[#allocation31_spill]] %s3992_s27  ;;  %s2134_s13 = sshll.u32 %s2917_s8, 2 }
  0x72   : > { %s3994_s0 = scalar_select %p3251_p11, 1, 0 }
  0x73   : > { %p2449_p6 = pneg %p3251_p11  ;;  %s325_s14 = sadd.s32 %s2921_s9, %s2134_s13 }
  0x74   : > { %s2056_s18 = sshll.u32 %s325_s14, 6  ;;  %s162_s27 = sadd.s32 1, %s2881_s23 }
  0x75   : > { %p3261_p9 = pnand %p2449_p6, %p3952_p0  ;;  %s3268_s26 = scalar_lea.hbm %s3923_s2, %s2056_s18 }
  0x76   : > { %s2679_s8 = scalar_lea.hbm %s3924_s3, 256 }
  0x77   : > { %p2680_p13 = scmp.ne.s32.totalorder %s3924_s3, %s2679_s8  ;;  %p2681_p12 = pneg %p3261_p9 }
  0x78   : > { %p2686_p6 = scmp.lt.u32.totalorder %s2679_s8, %s3924_s3 }
  0x79   : > { %p2682_p1 = pnand %p2681_p12, %p2680_p13 }
  0x7b   : > { %p2683_p2 = pneg %p2682_p1 }
  0x7d   : > { %p2688_p0 = pnand %p2686_p6, %p2683_p2 }
  0x7f   : > { %2691 = shalt.err (!%p2688_p0)
}
  0x80   : > { %s2692_s1 = scalar_lea.vmem %s256_s29, 256  ;;  %p2700_p4 = scmp.lt.s32.totalorder %s256_s29, %s256_s29 }
  0x81   : > { %p2693_p10 = scmp.ne.s32.totalorder %s256_s29, %s2692_s1  ;;  %p2701_p7 = scmp.lt.s32.totalorder %s2692_s1, %s2692_s1 }
  0x83   : > { %p2695_p3 = pnand %p2693_p10, %p2681_p12  ;;  %p2702_p11 = por %p2701_p7, %p2700_p4 }
  0x85   : > { %p2696_p8 = pneg %p2695_p3 }
  0x87   : > { %p2703_p5 = pnand %p2702_p11, %p2696_p8 }
  0x89   : > { %2706 = shalt.err (!%p2703_p5)
}
  0x8a   : > { %s3996_s21 = smov 8   ;;  %s2707_s8 = scalar_lea.hbm %s3268_s26, 128 }
  0x8b   : > { %2452 = dma.hbm_to_vmem [thread:$0]  (!%p3261_p9), %s3924_s3, 256, %s256_s29, [#allocation10], %s3985_s6, %s3985_s6, %s3996_s21  }
  0x8c   : > { %p2708_p10 = scmp.ne.s32.totalorder %s3268_s26, %s2707_s8  ;;  %p3997_p0 = scmp.ne.s32.totalorder %s3982_s20, 0 }
  0x8d   : > { %s2712_s19 = scalar_lea.hbm %s3923_s2, 512  ;;  %p2713_p8 = scmp.lt.u32.totalorder %s3268_s26, %s3923_s2 }
  0x8e   : > { %p3998_p7 = pneg %p3997_p0  ;;  %p2714_p3 = scmp.lt.u32.totalorder %s2712_s19, %s2707_s8 }
  0x8f   : > { %p2716_p13 = scmp.lt.u32.totalorder %s2707_s8, %s3268_s26 }
  0x90   : > { %p2710_p4 = pnand %p2708_p10, %p3998_p7  ;;  %p2715_p11 = por %p2714_p3, %p2713_p8 }
  0x92   : > { %p2711_p5 = pneg %p2710_p4  ;;  %p2717_p12 = por %p2716_p13, %p2715_p11 }
  0x94   : > { %p2718_p1 = pnand %p2717_p12, %p2711_p5 }
  0x96   : > { %2721 = shalt.err (!%p2718_p1)
}
  0x97   : > { %s2722_s29 = scalar_lea.vmem %s3211_s12, 128  ;;  %p3999_p2 = pmov %p3998_p7 }
  0x98   : > { %p2723_p9 = scmp.ne.s32.totalorder %s3211_s12, %s2722_s29  ;;  %s2935_s14 = smov [#allocation8]  }
  0x99   : > { %s2727_s1 = sshll.u32 %s2935_s14, 4  ;;  %s2728_s1 = int_to_ptr.vmem [resolvable:$false] %s2727_s1 }
  0x9a   : > { %p2725_p6 = pnand %p2723_p9, %p3999_p2  ;;  %s2729_s30 = scalar_lea.vmem %s2728_s1, 256 }
  0x9b   : > { %p2730_p7 = scmp.lt.s32.totalorder %s3211_s12, %s2728_s1  ;;  %p2731_p4 = scmp.lt.s32.totalorder %s2729_s30, %s2722_s29 }
  0x9c   : > { %p2726_p10 = pneg %p2725_p6 }
  0x9d   : > { %p2732_p8 = por %p2731_p4, %p2730_p7 }
  0x9f   : > { %p2733_p3 = pnand %p2732_p8, %p2726_p10 }
  0xa1   : > { %2736 = shalt.err (!%p2733_p3)
}
  0xa2   : > { %s4000_s18 = smov 4   ;;  %s4001_s8 = smov 64  }
  0xa3   : > { %2462 = dma.hbm_to_vmem [thread:$0]  (!%p3997_p0), %s3268_s26, 128, %s3211_s12, %s3179_s11, %s3985_s6, %s4001_s8, %s4000_s18  }
  0xa4   : > { %p4002_p5 = scmp.eq.s32.totalorder %s3150_s7, 0  ;;  %p169_p11 = scmp.ne.s32.totalorder %s2881_s23, %s2877_s22 }
  0xa5   : > { %s340_s15 = sand.u32 1, %s2881_s23   ;;  %s2058_s19 = sshll.u32 %s2921_s9, 7 }
  0xa6   : > { %s3322_s20 = scalar_select %p4002_p5, %s2881_s23, %s162_s27  }
  0xa7   : > { %s2057_s16 = sshll.u32 %s340_s15, 5  ;;  %p4003_p13 = scmp.eq.s32.totalorder %s2925_s10, 0 }
  0xa8   : > { %p4004_p1 = scmp.eq.s32.totalorder %s3214_s5, 3  ;;  %s3339_s14 = scalar_lea.hbm %s3925_s4, %s2058_s19 }
  0xa9   : > { %p171_p12 = por %p169_p11, %p4003_p13  ;;  %s342_s26 = scalar_lea.vmem [#allocation11], %s2057_s16 }
  0xaa   : > { %p3332_p9 = por %p4004_p1, %p169_p11  ;;  %s348_s7 = sshll.u32 %s342_s26, 4  ;;  %s3347_s7 = int_to_ptr.vmem [resolvable:$true] %s348_s7 }
  0xab   : > { %p4006_p0 = scmp.lt.s32.totalorder %s2925_s10, 4  ;;  %s2737_s12 = scalar_lea.hbm %s3339_s14, 512 }
  0xac   : > { %p2738_p6 = scmp.ne.s32.totalorder %s3339_s14, %s2737_s12  ;;  %s2742_s30 = scalar_lea.hbm %s3925_s4, 1024 }
  0xad   : > { %p3343_p2 = pnand %p4006_p0, %p171_p12  ;;  %p2743_p8 = scmp.lt.u32.totalorder %s3339_s14, %s3925_s4 }
  0xae   : > { %p2744_p3 = scmp.lt.u32.totalorder %s2742_s30, %s2737_s12  ;;  %p2746_p11 = scmp.lt.u32.totalorder %s2737_s12, %s3339_s14 }
  0xaf   : > { %p2739_p10 = pneg %p3343_p2 }
  0xb0   : > { %p2745_p5 = por %p2744_p3, %p2743_p8 }
  0xb1   : > { %p2740_p7 = pnand %p2739_p10, %p2738_p6 }
  0xb2   : > { %p2747_p13 = por %p2746_p11, %p2745_p5 }
  0xb3   : > { %p2741_p4 = pneg %p2740_p7 }
  0xb5   : > { %p2748_p12 = pnand %p2747_p13, %p2741_p4 }
  0xb7   : > { %2751 = shalt.err (!%p2748_p12)
}
  0xb8   : > { %s2752_s15 = scalar_lea.vmem %s3347_s7, 512  ;;  %s2936_s16 = smov [#allocation11]  }
  0xb9   : > { %p2753_p1 = scmp.ne.s32.totalorder %s3347_s7, %s2752_s15  ;;  %s2757_s19 = sshll.u32 %s2936_s16, 4  ;;  %s2758_s19 = int_to_ptr.vmem [resolvable:$false] %s2757_s19 }
  0xba   : > { %s2759_s13 = scalar_lea.vmem %s2758_s19, 1024  ;;  %p2760_p7 = scmp.lt.s32.totalorder %s3347_s7, %s2758_s19 }
  0xbb   : > { %p2755_p0 = pnand %p2753_p1, %p2739_p10  ;;  %p2761_p8 = scmp.lt.s32.totalorder %s2759_s13, %s2752_s15 }
  0xbd   : > { %p2756_p6 = pneg %p2755_p0  ;;  %p2762_p3 = por %p2761_p8, %p2760_p7 }
  0xbf   : > { %p2763_p5 = pnand %p2762_p3, %p2756_p6 }
  0xc1   : > { %2766 = shalt.err (!%p2763_p5)
}
  0xc2   : > { %s4008_s29 = smov 256   ;;  %s4009_s26 = sld [smem:[#allocation26_spill]] }
  0xc3   : > { %p4010_p10 = scmp.ne.s32.totalorder %s3994_s0, 0 }
  0xc4   : > { %s368_s12 = sand.u32 (!%p4010_p10), 1, %s3214_s5   ;;  %s370_s27 = sand.u32 (!%p4010_p10), 1, %s2901_s28  }
  0xc5   : > { %366 = sbr.rel (%p4010_p10) target bundleno = 878 (0x36e), region = 44  ;;  %s2060_s1 = sshll.u32 (!%p4010_p10), %s370_s27, 6 }
  0xc6   : > { %s369_s30 = scalar_lea.sflag (!%p4010_p10), [#allocation4], %s368_s12  ;;  %s3382_s18 = scalar_lea.vmem (!%p4010_p10), [#allocation3], %s2060_s1 }
  0xc7   : > { %p4011_p4 = scmp.ne.s32.totalorder (!%p4010_p10), %s3987_s17, 0 }
  0xc8   : > { %2465 = dma.hbm_to_vmem [thread:$0]  (!%p3343_p2), %s3339_s14, 512, %s3347_s7, %s4009_s26, %s4008_s29, %s3985_s6, %s3996_s21  }
  0xcc   : > { %2852 = dma.done.wait (%p4011_p4), %s369_s30, 1024  }
  0xcd   : > { %2854 = vsyncadd (%p4011_p4), %s369_s30, 4294966272  ;;  %s4012_s11 = sld [smem:[#allocation29_spill]]  ;;  %s379_s6 = sand.u32 1, %s2889_s25  }
  0xce   : > { %s2061_s21 = sshll.u32 %s379_s6, 7  ;;  %s378_s0 = scalar_lea.sflag [#allocation7], %s368_s12 }
  0xcf   : > { %s3389_s14 = scalar_lea.vmem [#allocation6], %s2061_s21 }
  0xd3   : > { %p4013_p2 = scmp.ne.s32.totalorder %s4012_s11, 0 }
  0xd5   : > { %2856 = dma.done.wait (%p4013_p2), %s378_s0, 2176  }
  0xd6   : > { %2858 = vsyncadd (%p4013_p2), %s378_s0, 4294965120  ;;  %s3395_s7 = sshll.u32 %s379_s6, 3  ;;  %p4014_p11 = scmp.eq.s32.totalorder %s3214_s5, 0 }
  0xd7   : > { %s390_s8 = scalar_lea.vmem [#allocation8], %s3395_s7 }
  0xd8   : > { %2860 = dma.done.wait (%p4014_p11), [#allocation10], 256   ;;  %p4015_p13 = pmov %p4014_p11 }
  0xd9   : > { %s4016_s17 = sld [smem:[#allocation30_spill]]  ;;  %s3403_s15 = sand.u32 1, %s2877_s22  }
  0xda   : > { %2862 = vsyncadd (%p4015_p13), [#allocation10], 4294967040  ;;  %s2064_s16 = sshll.u32 %s3403_s15, 5 }
  0xdb   : > { %s403_s19 = scalar_lea.vmem [#allocation11], %s2064_s16 }
  0xdf   : > { %p4017_p12 = scmp.ne.s32.totalorder %s4016_s17, 0 }
  0xe1   : > { %2864 = dma.done.wait (%p4017_p12), %s369_s30, 512  }
  0xe2   : > { %2866 = vsyncadd (%p4017_p12), %s369_s30, 4294966784  ;;  %s4018_s13 = sld [smem:[#allocation22_spill]]  ;;  %s2065_s29 = sshll.u32 %s3403_s15, 3 }
  0xe3   : > { %s4019_s12 = sld [smem:[#allocation34_spill]]  ;;  %s3419_s1 = scalar_lea.vmem [#allocation12], %s2065_s29 }
  0xe4   : > { %s4020_s11 = sld [smem:[#allocation21_spill]] }
  0xe8   : > { %p454_p1 = scmp.lt.s32.totalorder %s4018_s13, 1 }
  0xea   : > { %s4054_s13 = smov (!%p454_p1, %s4018_s13), 1  ;;  %p2066_p0 = scmp.ne.s32.totalorder %s4020_s11, 0 }
  0xeb   : > { %s456_s27 = scalar_lea.vmem %s4019_s12, %s4054_s13  ;;  %v465_v0 = vld [vmem:[%s403_s19] sm:$0xff] (!%p2066_p0)  ;;  %v466_v1 = vld [vmem:[%s403_s19 + $0x8] sm:$0xff] (!%p2066_p0)  ;;  %v467_v2 = vld [vmem:[%s403_s19 + $0x10] sm:$0xff] (!%p2066_p0)  ;;  %vm469_vm0 = vcmask (!%p2066_p0), 261120  }
  0xec   : > { %462 = sbr.rel (%p2066_p0) target bundleno = 462 (0x1ce), region = 68  ;;  %v2391_v3 = vpack.c.bf16 (!%p2066_p0), %v466_v1, %v465_v0  ;;  %v468_v4 = vld [vmem:[%s403_s19 + $0x18] sm:$0xff] (!%p2066_p0)  ;;  %v463_v5 = vld [vmem:[#allocation9] sm:$0xff] (!%p2066_p0) }
  0xed   : > { %v2395_v6 = vpack.c.bf16 (!%p2066_p0), %v468_v4, %v467_v2  ;;  %2228 = vmatprep.mubr.msk.f32.mxu0 (!%p2066_p0), %vm469_vm0, %v463_v5  ;;  %v464_v7 = vld [vmem:[#allocation9 + $0x8] sm:$0xff] (!%p2066_p0) }
  0xee   : > { %2392 = vmatprep.subr.bf16.mxu0 (!%p2066_p0), %v2391_v3 }
  0xef   : > { %2394 = vmatpush3.bf16.msra.mxu0 (!%p2066_p0), %v2391_v3 }
  0xf0   : > { %2396 = vmatprep.subr.bf16.mxu0 (!%p2066_p0), %v2395_v6 }
  0xf3   : > { %2398 = vmatpush3.bf16.msra.mxu0 %v2395_v6 }
  0xf6   : > { %2229 = vmatmul.mubr.msk.f32.vlgmr.msra.gmra.mrb[0].mxu0 %vm469_vm0, %v464_v7 }
 0x1c9   : > { %v2230_v8 = vpop.f32.mrb[0].mxu0 }
 0x1ca   : > { %v552_v9 = vsub.f32 0.0, %v2230_v8  ;;  %v542_v10 = vpop.f32.mrb[1].mxu0 }
 0x1cb   : > { %v551_v11 = vsub.f32 0.0, %v542_v10 }
 0x1cc   : > { %554 = vst [vmem:[#allocation2 + $0x8] sm:$0xff] %v552_v9 }
 0x1cd   : > { %553 = vst [vmem:[#allocation2] sm:$0xff] %v551_v11 }
 0x1ce PF: > { %v3423_v12 = vld [vmem:[%s3389_s14] sm:$0xff]  ;;  %v3426_v13 = vld [vmem:[%s3389_s14 + $0x8] sm:$0xff]  ;;  %v586_v14 = vlaneseq  ;;  %v2937_v15 = vmov 0.0   ;;  %v2938_v17 = vmov 1966171168   ;;  %v3437_v25 = vld [vmem:[%s3389_s14 + $0x10] sm:$0xff] }
 0x1cf   : > { %2231 = vmatprep.subr.bf16.mxu1 %v2937_v15  ;;  %2311 = vmatprep.subr.bf16.mxu0 %v2937_v15  ;;  %v2069_v16 = vld.sshfl [vmem:[%s390_s8] sm:$0x33 pattern:$0x75316420]  ;;  %v584_v18 = vunpack.c.l.s4 %v2938_v17  ;;  %v831_v19 = vand.u32 15, %v3423_v12  ;;  %v832_v20 = vand.u32 15, %v3426_v13 }
 0x1d0   : > { %v582_v21 = vcombine.high %v2069_v16, %v2069_v16  ;;  %v587_v22 = vshrl.u32 %v586_v14, 7  ;;  %v1342_v23 = vshra.s32 %v3423_v12, 16  ;;  %v1343_v24 = vshra.s32 %v3426_v13, 16  ;;  %v3444_v29 = vld [vmem:[%s3389_s14 + $0x18] sm:$0xff]  ;;  %v3461_v43 = vld [vmem:[%s3389_s14 + $0x20] sm:$0xff]  ;;  %v3466_v47 = vld [vmem:[%s3389_s14 + $0x28] sm:$0xff] }
 0x1d1   : > { %v585_v26 = vunpack.c.0.s8 %v584_v18  ;;  %v3439_v27 = vcvt.s32.f32 %v831_v19  ;;  %v3441_v28 = vcvt.s32.f32 %v832_v20  ;;  %v833_v30 = vand.u32 15, %v3437_v25  ;;  %s4021_s30 = sld [smem:[#allocation21_spill]] }
 0x1d2   : > { %v3447_v31 = vsub.s32 0, %v587_v22  ;;  %v1358_v32 = vand.u32 15, %v1342_v23  ;;  %v1359_v33 = vand.u32 15, %v1343_v24  ;;  %v834_v34 = vand.u32 15, %v3444_v29  ;;  %v3487_v24 = vld [vmem:[%s3389_s14 + $0x30] sm:$0xff] }
 0x1d3   : > { %v3450_v35 = vsub.s32 %v585_v26, %v587_v22  ;;  %v863_v36 = vpack.c.bf16 %v3441_v28, %v3439_v27  ;;  %v3454_v37 = vcvt.s32.f32 %v833_v30  ;;  %v1344_v38 = vshra.s32 %v3437_v25, 16 }
 0x1d4   : > { %v1374_v39 = vcvt.s32.f32 %v1358_v32  ;;  %v1375_v40 = vcvt.s32.f32 %v1359_v33  ;;  %v3457_v41 = vcvt.s32.f32 %v834_v34  ;;  %v1345_v42 = vshra.s32 %v3444_v29, 16 }
 0x1d5   : > { %v589_v44 = vrot.slane %v2069_v16, %v3450_v35  ;;  %v596_v45 = vrot.slane %v582_v21, %v3450_v35  ;;  %v1360_v46 = vand.u32 15, %v1344_v38  ;;  %v835_v48 = vand.u32 15, %v3461_v43 }
 0x1d6   : > { %v3469_v49 = vpack.c.bf16 %v1375_v40, %v1374_v39  ;;  %v864_v50 = vpack.c.bf16 %v3457_v41, %v3454_v37  ;;  %v1361_v51 = vand.u32 15, %v1345_v42  ;;  %v836_v52 = vand.u32 15, %v3466_v47  ;;  %v3498_v42 = vld [vmem:[%s3389_s14 + $0x38] sm:$0xff] }
 0x1d7   : > { %v624_v53 = vunpack.i.h.s16 %v589_v44  ;;  %v2071_v54 = vpack.i.b16 %v589_v44, %v589_v44  ;;  %v626_v55 = vunpack.i.h.s16 %v596_v45  ;;  %v2072_v56 = vpack.i.b16 %v596_v45, %v596_v45  ;;  %p2125_p6 = scmp.ne.s32.totalorder %s4021_s30, 1 }
 0x1d8   : > { %v1376_v57 = vcvt.s32.f32 %v1360_v46  ;;  %v1377_v58 = vcvt.s32.f32 %v1361_v51  ;;  %v597_v59 = vcombine.high %v589_v44, %v589_v44  ;;  %v851_v60 = vcvt.s32.f32 %v835_v48 }
 0x1d9   : > { %v640_v61 = vpack.i.b16 %v624_v53, %v624_v53  ;;  %v658_v62 = vrot.slane %v2071_v54, %v3447_v31  ;;  %v642_v63 = vpack.i.b16 %v626_v55, %v626_v55  ;;  %v666_v0 = vrot.slane %v2072_v56, %v3447_v31  ;;  %v2070_v53 = vld.sshfl [vmem:[%s390_s8 + $0x4] sm:$0x33 pattern:$0x75316420] }
 0x1da   : > { %v3476_v1 = vpack.c.bf16 %v1377_v58, %v1376_v57  ;;  %v628_v2 = vunpack.i.h.s16 %v597_v59  ;;  %v2073_v3 = vpack.i.b16 %v597_v59, %v597_v59  ;;  %v852_v4 = vcvt.s32.f32 %v836_v52 }
 0x1db   : > { %v662_v5 = vrot.slane %v640_v61, %v3447_v31  ;;  %v720_v6 = vpack.i.b16 %v658_v62, %v658_v62  ;;  %v670_v7 = vrot.slane %v642_v63, %v3447_v31  ;;  %v734_v8 = vpack.i.b16 %v666_v0, %v666_v0 }
 0x1dc   : > { %v644_v9 = vpack.i.b16 %v628_v2, %v628_v2  ;;  %v674_v10 = vrot.slane %v2073_v3, %v3447_v31  ;;  %v865_v11 = vpack.c.bf16 %v852_v4, %v851_v60  ;;  %v1346_v14 = vshra.s32 %v3461_v43, 16 }
 0x1dd   : > { %v725_v16 = vrot.slane %v720_v6, %v3447_v31  ;;  %v727_v17 = vpack.i.b16 %v662_v5, %v662_v5  ;;  %v739_v18 = vrot.slane %v734_v8, %v3447_v31  ;;  %v741_v19 = vpack.i.b16 %v670_v7, %v670_v7  ;;  %v3534_v6 = vld [vmem:[%s3389_s14 + $0x48] sm:$0xff] }
 0x1de   : > { %v678_v20 = vrot.slane %v644_v9, %v3447_v31  ;;  %v748_v21 = vpack.i.b16 %v674_v10, %v674_v10  ;;  %v1347_v22 = vshra.s32 %v3466_v47, 16  ;;  %v1362_v23 = vand.u32 15, %v1346_v14 }
 0x1df   : > { %v732_v26 = vrot.slane %v727_v17, %v3447_v31  ;;  %v746_v30 = vrot.slane %v741_v19, %v3447_v31  ;;  %v598_v32 = vcombine.high %v596_v45, %v596_v45  ;;  %v837_v33 = vand.u32 15, %v3487_v24 }
 0x1e0   : > { %v753_v34 = vrot.slane %v748_v21, %v3447_v31  ;;  %v755_v37 = vpack.i.b16 %v678_v20, %v678_v20  ;;  %v1363_v38 = vand.u32 15, %v1347_v22  ;;  %v1378_v39 = vcvt.s32.f32 %v1362_v23 }
 0x1e1   : > { %v3493_v40 = vcombine.low %v725_v16, %v732_v26  ;;  %v3495_v41 = vcombine.low %v739_v18, %v746_v30  ;;  %v630_v44 = vunpack.i.h.s16 %v598_v32  ;;  %v2074_v46 = vpack.i.b16 %v598_v32, %v598_v32 }
 0x1e2   : > { %v760_v48 = vrot.slane %v755_v37, %v3447_v31  ;;  %v1379_v51 = vcvt.s32.f32 %v1363_v38  ;;  %v838_v45 = vand.u32 15, %v3498_v42  ;;  %v3502_v52 = vcvt.s32.f32 %v837_v33  ;;  %v3551_v38 = vld [vmem:[%s3389_s14 + $0x50] sm:$0xff] }
 0x1e3   : > { %v919_v54 = vmul.bf16 %v3493_v40, %v863_v36  ;;  %v1398_v55 = vmul.bf16 %v3493_v40, %v3469_v49  ;;  %v920_v56 = vmul.bf16 %v3495_v41, %v864_v50  ;;  %v1399_v57 = vmul.bf16 %v3495_v41, %v3476_v1  ;;  %v3521_v49 = vld [vmem:[%s3389_s14 + $0x40] sm:$0xff] }
 0x1e4   : > { %v3515_v58 = vcombine.low %v753_v34, %v760_v48  ;;  %v1392_v59 = vpack.c.bf16 %v1379_v51, %v1378_v39  ;;  %v646_v60 = vpack.i.b16 %v630_v44, %v630_v44  ;;  %v682_v61 = vrot.slane %v2074_v46, %v3447_v31  ;;  %v3554_v46 = vld [vmem:[%s3389_s14 + $0x58] sm:$0xff] }
 0x1e5   : > { %2232 = vmatpush3.bf16.msra.mxu1 %v919_v54  ;;  %2312 = vmatpush3.bf16.msra.mxu0 %v1398_v55  ;;  %v854_v27 = vcvt.s32.f32 %v838_v45  ;;  %v1348_v28 = vshra.s32 %v3487_v24, 16  ;;  %v1349_v36 = vshra.s32 %v3498_v42, 16  ;;  %v3524_v50 = vrot.slane %v2070_v53, %v3450_v35 }
 0x1e6   : > { %2233 = vmatprep.subr.bf16.mxu1 %v2937_v15  ;;  %2313 = vmatprep.subr.bf16.mxu0 %v2937_v15  ;;  %v921_v62 = vmul.bf16 %v3515_v58, %v865_v11  ;;  %v1400_v63 = vmul.bf16 %v3515_v58, %v1392_v59  ;;  %v686_v0 = vrot.slane %v646_v60, %v3447_v31  ;;  %v839_v1 = vand.u32 15, %v3521_v49 }
 0x1e7   : > { %v762_v2 = vpack.i.b16 %v682_v61, %v682_v61  ;;  %v866_v3 = vpack.c.bf16 %v854_v27, %v3502_v52  ;;  %v1364_v4 = vand.u32 15, %v1348_v28  ;;  %v1365_v5 = vand.u32 15, %v1349_v36 }
 0x1e8   : > { %v769_v7 = vpack.i.b16 %v686_v0, %v686_v0  ;;  %v632_v8 = vunpack.i.h.s16 %v3524_v50  ;;  %v2075_v9 = vpack.i.b16 %v3524_v50, %v3524_v50  ;;  %v840_v10 = vand.u32 15, %v3534_v6 }
 0x1e9   : > { %2234 = vmatpush3.bf16.msra.mxu1 %v920_v56  ;;  %2314 = vmatpush3.bf16.msra.mxu0 %v1399_v57  ;;  %v767_v11 = vrot.slane %v762_v2, %v3447_v31  ;;  %v1380_v14 = vcvt.s32.f32 %v1364_v4  ;;  %v1381_v16 = vcvt.s32.f32 %v1365_v5  ;;  %v855_v17 = vcvt.s32.f32 %v839_v1 }
 0x1ea   : > { %2235 = vmatprep.subr.bf16.mxu1 %v2937_v15  ;;  %2315 = vmatprep.subr.bf16.mxu0 %v2937_v15  ;;  %v774_v18 = vrot.slane %v769_v7, %v3447_v31  ;;  %v648_v19 = vpack.i.b16 %v632_v8, %v632_v8  ;;  %v690_v20 = vrot.slane %v2075_v9, %v3447_v31  ;;  %v856_v21 = vcvt.s32.f32 %v840_v10 }
 0x1eb   : > { %v1393_v22 = vpack.c.bf16 %v1381_v16, %v1380_v14  ;;  %v1350_v23 = vshra.s32 %v3521_v49, 16  ;;  %v1351_v26 = vshra.s32 %v3534_v6, 16  ;;  %v606_v30 = vcombine.high %v2070_v53, %v2070_v53 }
 0x1ec   : > { %v3547_v32 = vcombine.low %v767_v11, %v774_v18  ;;  %v694_v33 = vrot.slane %v648_v19, %v3447_v31  ;;  %v776_v34 = vpack.i.b16 %v690_v20, %v690_v20  ;;  %v867_v37 = vpack.c.bf16 %v856_v21, %v855_v17  ;;  %v3582_v21 = vld [vmem:[%s3389_s14 + $0x68] sm:$0xff] }
 0x1ed   : > { %2236 = vmatpush3.bf16.msra.mxu1 %v921_v62  ;;  %2316 = vmatpush3.bf16.msra.mxu0 %v1400_v63  ;;  %v1366_v39 = vand.u32 15, %v1350_v23  ;;  %v1367_v44 = vand.u32 15, %v1351_v26  ;;  %v620_v48 = vrot.slane %v606_v30, %v3450_v35  ;;  %v841_v51 = vand.u32 15, %v3551_v38 }
 0x1ee   : > { %2237 = vmatprep.subr.bf16.mxu1 %v2937_v15  ;;  %2317 = vmatprep.subr.bf16.mxu0 %v2937_v15  ;;  %v922_v45 = vmul.bf16 %v3547_v32, %v866_v3  ;;  %v1401_v52 = vmul.bf16 %v3547_v32, %v1393_v22  ;;  %v781_v53 = vrot.slane %v776_v34, %v3447_v31  ;;  %v842_v54 = vand.u32 15, %v3554_v46  ;;  %v3571_v3 = vld [vmem:[%s3389_s14 + $0x60] sm:$0xff] }
 0x1ef   : > { %v783_v55 = vpack.i.b16 %v694_v33, %v694_v33  ;;  %v1382_v56 = vcvt.s32.f32 %v1366_v39  ;;  %v1383_v57 = vcvt.s32.f32 %v1367_v44  ;;  %v634_v59 = vunpack.i.h.s16 %v620_v48 }
 0x1f0   : > { %v2076_v35 = vpack.i.b16 %v620_v48, %v620_v48  ;;  %v857_v60 = vcvt.s32.f32 %v841_v51  ;;  %v858_v61 = vcvt.s32.f32 %v842_v54  ;;  %v1352_v27 = vshra.s32 %v3551_v38, 16 }
 0x1f1   : > { %2238 = vmatpush3.bf16.msra.mxu1 %v922_v45  ;;  %2318 = vmatpush3.bf16.msra.mxu0 %v1401_v52  ;;  %v788_v28 = vrot.slane %v783_v55, %v3447_v31  ;;  %v1394_v36 = vpack.c.bf16 %v1383_v57, %v1382_v56  ;;  %v650_v62 = vpack.i.b16 %v634_v59, %v634_v59  ;;  %v1353_v63 = vshra.s32 %v3554_v46, 16  ;;  %v3594_v52 = vld [vmem:[%s3389_s14 + $0x70] sm:$0xff] }
 0x1f2   : > { %2239 = vmatprep.subr.bf16.mxu1 %v2937_v15  ;;  %2319 = vmatprep.subr.bf16.mxu0 %v2937_v15  ;;  %v698_v0 = vrot.slane %v2076_v35, %v3447_v31  ;;  %v868_v1 = vpack.c.bf16 %v858_v61, %v857_v60  ;;  %v1368_v2 = vand.u32 15, %v1352_v27  ;;  %v621_v4 = vcombine.high %v3524_v50, %v3524_v50  ;;  %v3601_v61 = vld [vmem:[%s3389_s14 + $0x78] sm:$0xff] }
 0x1f3   : > { %v3575_v5 = vcombine.low %v781_v53, %v788_v28  ;;  %v702_v7 = vrot.slane %v650_v62, %v3447_v31  ;;  %v1369_v8 = vand.u32 15, %v1353_v63  ;;  %v843_v9 = vand.u32 15, %v3571_v3 }
 0x1f4   : > { %v790_v10 = vpack.i.b16 %v698_v0, %v698_v0  ;;  %v1384_v11 = vcvt.s32.f32 %v1368_v2  ;;  %v636_v14 = vunpack.i.h.s16 %v621_v4  ;;  %v2077_v16 = vpack.i.b16 %v621_v4, %v621_v4 }
 0x1f5   : > { %v923_v17 = vmul.bf16 %v3575_v5, %v867_v37  ;;  %v1402_v18 = vmul.bf16 %v3575_v5, %v1394_v36  ;;  %v797_v19 = vpack.i.b16 %v702_v7, %v702_v7  ;;  %v1385_v20 = vcvt.s32.f32 %v1369_v8 }
 0x1f6   : > { %v795_v50 = vrot.slane %v790_v10, %v3447_v31  ;;  %v652_v22 = vpack.i.b16 %v636_v14, %v636_v14  ;;  %v706_v23 = vrot.slane %v2077_v16, %v3447_v31  ;;  %v844_v26 = vand.u32 15, %v3582_v21 }
 0x1f7   : > { %2240 = vmatpush3.bf16.msra.mxu1 %v923_v17  ;;  %2320 = vmatpush3.bf16.msra.mxu0 %v1402_v18  ;;  %v802_v30 = vrot.slane %v797_v19, %v3447_v31  ;;  %v1395_v33 = vpack.c.bf16 %v1385_v20, %v1384_v11  ;;  %v859_v34 = vcvt.s32.f32 %v843_v9  ;;  %v1354_v37 = vshra.s32 %v3571_v3, 16 }
 0x1f8   : > { %2241 = vmatprep.subr.bf16.mxu1 %v2937_v15  ;;  %2321 = vmatprep.subr.bf16.mxu0 %v2937_v15  ;;  %v710_v39 = vrot.slane %v652_v22, %v3447_v31  ;;  %v804_v44 = vpack.i.b16 %v706_v23, %v706_v23  ;;  %v860_v51 = vcvt.s32.f32 %v844_v26  ;;  %v1355_v45 = vshra.s32 %v3582_v21, 16 }
 0x1f9   : > { %v3596_v53 = vcombine.low %v795_v50, %v802_v30  ;;  %v1370_v54 = vand.u32 15, %v1354_v37  ;;  %v622_v55 = vcombine.high %v620_v48, %v620_v48  ;;  %v845_v56 = vand.u32 15, %v3594_v52 }
 0x1fa   : > { %v809_v57 = vrot.slane %v804_v44, %v3447_v31  ;;  %v811_v59 = vpack.i.b16 %v710_v39, %v710_v39  ;;  %v869_v35 = vpack.c.bf16 %v860_v51, %v859_v34  ;;  %v1371_v60 = vand.u32 15, %v1355_v45 }
 0x1fb   : > { %v924_v27 = vmul.bf16 %v3596_v53, %v868_v1  ;;  %v1403_v28 = vmul.bf16 %v3596_v53, %v1395_v33  ;;  %v1386_v36 = vcvt.s32.f32 %v1370_v54  ;;  %v638_v62 = vunpack.i.h.s16 %v622_v55 }
 0x1fc   : > { %v816_v63 = vrot.slane %v811_v59, %v3447_v31  ;;  %v1387_v0 = vcvt.s32.f32 %v1371_v60  ;;  %v2078_v2 = vpack.i.b16 %v622_v55, %v622_v55  ;;  %v846_v48 = vand.u32 15, %v3601_v61 }
 0x1fd   : > { %2242 = vmatpush3.bf16.msra.mxu1 %v924_v27  ;;  %2322 = vmatpush3.bf16.msra.mxu0 %v1403_v28  ;;  %v654_v4 = vpack.i.b16 %v638_v62, %v638_v62  ;;  %v861_v7 = vcvt.s32.f32 %v845_v56  ;;  %v1356_v8 = vshra.s32 %v3594_v52, 16  ;;  %v1357_v9 = vshra.s32 %v3601_v61, 16 }
 0x1fe   : > { %2243 = vmatprep.subr.bf16.mxu1 %v2937_v15  ;;  %2323 = vmatprep.subr.bf16.mxu0 %v2937_v15  ;;  %v3611_v1 = vcombine.low %v809_v57, %v816_v63  ;;  %v1396_v10 = vpack.c.bf16 %v1387_v0, %v1386_v36  ;;  %v714_v11 = vrot.slane %v2078_v2, %v3447_v31  ;;  %v862_v14 = vcvt.s32.f32 %v846_v48 }
 0x1ff   : > { %v718_v16 = vrot.slane %v654_v4, %v3447_v31  ;;  %v1372_v17 = vand.u32 15, %v1356_v8  ;;  %v1373_v18 = vand.u32 15, %v1357_v9  ;;  %vm2939_vm1 = vmmov 0   ;;  %v2598_v8 = vld [vmem:[%s3382_s18] sm:$0xff]  }
 0x200   : > { %v925_v19 = vmul.bf16 %v3611_v1, %v869_v35  ;;  %v1404_v20 = vmul.bf16 %v3611_v1, %v1396_v10  ;;  %v818_v50 = vpack.i.b16 %v714_v11, %v714_v11  ;;  %v870_v22 = vpack.c.bf16 %v862_v14, %v861_v7  ;;  %2247 = vmatprep.mubr.msk.bf16.mxu1 %vm2939_vm1, %v2937_v15  ;;  %v2599_v10 = vld [vmem:[%s3382_s18 + $0x20] sm:$0xff]  }
 0x201   : > { %v825_v23 = vpack.i.b16 %v718_v16, %v718_v16  ;;  %v1388_v26 = vcvt.s32.f32 %v1372_v17  ;;  %v1389_v30 = vcvt.s32.f32 %v1373_v18  ;;  %2327 = vmatprep.mubr.msk.bf16.mxu0 %vm2939_vm1, %v2937_v15  ;;  %v982_v33 = vshra.s32 %v3423_v12, 4 }
 0x202   : > { %2244 = vmatpush3.bf16.msra.mxu1 %v925_v19  ;;  %2324 = vmatpush3.bf16.msra.mxu0 %v1404_v20  ;;  %v823_v34 = vrot.slane %v818_v50, %v3447_v31  ;;  %v983_v37 = vshra.s32 %v3426_v13, 4  ;;  %v1462_v39 = vshra.s32 %v3423_v12, 20  ;;  %v1463_v44 = vshra.s32 %v3426_v13, 20 }
 0x203   : > { %2245 = vmatprep.subr.bf16.mxu1 %v2937_v15  ;;  %2325 = vmatprep.subr.bf16.mxu0 %v2937_v15  ;;  %v830_v51 = vrot.slane %v825_v23, %v3447_v31  ;;  %v1397_v45 = vpack.c.bf16 %v1389_v30, %v1388_v26  ;;  %v998_v54 = vand.u32 15, %v982_v33  ;;  %v984_v55 = vshra.s32 %v3437_v25, 4 }
 0x204   : > { %v999_v56 = vand.u32 15, %v983_v37  ;;  %v1478_v57 = vand.u32 15, %v1462_v39  ;;  %v1479_v59 = vand.u32 15, %v1463_v44  ;;  %v985_v35 = vshra.s32 %v3444_v29, 4 }
 0x205   : > { %v3631_v60 = vcombine.low %v823_v34, %v830_v51  ;;  %v1014_v27 = vcvt.s32.f32 %v998_v54  ;;  %v1000_v28 = vand.u32 15, %v984_v55  ;;  %v1464_v36 = vshra.s32 %v3437_v25, 20 }
 0x206   : > { %v1015_v62 = vcvt.s32.f32 %v999_v56  ;;  %v1494_v63 = vcvt.s32.f32 %v1478_v57  ;;  %v1495_v31 = vcvt.s32.f32 %v1479_v59  ;;  %v1001_v0 = vand.u32 15, %v985_v35 }
 0x207   : > { %v926_v2 = vmul.bf16 %v3631_v60, %v870_v22  ;;  %v1405_v48 = vmul.bf16 %v3631_v60, %v1397_v45  ;;  %v1016_v4 = vcvt.s32.f32 %v1000_v28  ;;  %v1465_v7 = vshra.s32 %v3444_v29, 20 }
 0x208   : > { %v1030_v9 = vpack.c.bf16 %v1015_v62, %v1014_v27  ;;  %v1510_v11 = vpack.c.bf16 %v1495_v31, %v1494_v63  ;;  %v1017_v14 = vcvt.s32.f32 %v1001_v0  ;;  %v1480_v16 = vand.u32 15, %v1464_v36 }
 0x209   : > { %2246 = vmatpush3.bf16.msra.mxu1 %v926_v2  ;;  %2326 = vmatpush3.bf16.msra.mxu0 %v1405_v48  ;;  %v1481_v17 = vand.u32 15, %v1465_v7  ;;  %v986_v18 = vshra.s32 %v3461_v43, 4  ;;  %v987_v19 = vshra.s32 %v3466_v47, 4  ;;  %v1466_v20 = vshra.s32 %v3461_v43, 20 }
 0x20a   : > { %2251 = vmatprep.subr.bf16.mxu1 %v2937_v15  ;;  %2331 = vmatprep.subr.bf16.mxu0 %v2937_v15  ;;  %v1038_v50 = vmul.bf16 %v3493_v40, %v1030_v9  ;;  %v1518_v22 = vmul.bf16 %v3493_v40, %v1510_v11  ;;  %v1031_v23 = vpack.c.bf16 %v1017_v14, %v1016_v4  ;;  %v1496_v26 = vcvt.s32.f32 %v1480_v16 }
 0x20b   : > { %v1497_v30 = vcvt.s32.f32 %v1481_v17  ;;  %v1002_v33 = vand.u32 15, %v986_v18  ;;  %v1003_v34 = vand.u32 15, %v987_v19  ;;  %v1467_v37 = vshra.s32 %v3466_v47, 20 }
 0x20c   : > { %2248 = vmatmul.mubr.bf16.vlgmr.msra.gmra.mrb[0].mxu1 %v2598_v8  ;;  %2328 = vmatmul.mubr.bf16.vlgmr.msra.gmra.mrb[0].mxu0 %v2599_v10  ;;  %v1039_v39 = vmul.bf16 %v3495_v41, %v1031_v23  ;;  %v1482_v44 = vand.u32 15, %v1466_v20  ;;  %v988_v51 = vshra.s32 %v3487_v24, 4  ;;  %v989_v45 = vshra.s32 %v3498_v42, 4 }
 0x20d   : > { %2252 = vmatpush3.bf16.msra.mxu1 %v1038_v50  ;;  %2332 = vmatpush3.bf16.msra.mxu0 %v1518_v22  ;;  %v1511_v54 = vpack.c.bf16 %v1497_v30, %v1496_v26  ;;  %v1018_v55 = vcvt.s32.f32 %v1002_v33  ;;  %v1019_v56 = vcvt.s32.f32 %v1003_v34  ;;  %v1483_v57 = vand.u32 15, %v1467_v37 }
 0x20e   : > { %2253 = vmatprep.subr.bf16.mxu1 %v2937_v15  ;;  %2333 = vmatprep.subr.bf16.mxu0 %v2937_v15  ;;  %v1498_v59 = vcvt.s32.f32 %v1482_v44  ;;  %v1004_v35 = vand.u32 15, %v988_v51  ;;  %v1005_v27 = vand.u32 15, %v989_v45  ;;  %v1468_v28 = vshra.s32 %v3487_v24, 20 }
 0x20f   : > { %v1519_v36 = vmul.bf16 %v3495_v41, %v1511_v54  ;;  %v1032_v62 = vpack.c.bf16 %v1019_v56, %v1018_v55  ;;  %v1499_v63 = vcvt.s32.f32 %v1483_v57  ;;  %v1469_v31 = vshra.s32 %v3498_v42, 20  ;;  %2267 = vmatprep.mubr.msk.bf16.mxu1 %vm2939_vm1, %v2937_v15  ;;  %2347 = vmatprep.mubr.msk.bf16.mxu0 %vm2939_vm1, %v2937_v15 }
 0x210   : > { %v1020_v0 = vcvt.s32.f32 %v1004_v35  ;;  %v1021_v2 = vcvt.s32.f32 %v1005_v27  ;;  %v1484_v48 = vand.u32 15, %v1468_v28  ;;  %v990_v4 = vshra.s32 %v3521_v49, 4 }
 0x211   : > { %2254 = vmatpush3.bf16.msra.mxu1 %v1039_v39  ;;  %2334 = vmatpush3.bf16.msra.mxu0 %v1519_v36  ;;  %v1040_v7 = vmul.bf16 %v3515_v58, %v1032_v62  ;;  %v1512_v8 = vpack.c.bf16 %v1499_v63, %v1498_v59  ;;  %v1485_v9 = vand.u32 15, %v1469_v31  ;;  %v991_v10 = vshra.s32 %v3534_v6, 4 }
 0x212   : > { %2255 = vmatprep.subr.bf16.mxu1 %v2937_v15  ;;  %2335 = vmatprep.subr.bf16.mxu0 %v2937_v15  ;;  %v1033_v11 = vpack.c.bf16 %v1021_v2, %v1020_v0  ;;  %v1500_v14 = vcvt.s32.f32 %v1484_v48  ;;  %v1006_v16 = vand.u32 15, %v990_v4  ;;  %v1470_v17 = vshra.s32 %v3521_v49, 20 }
 0x213   : > { %v1520_v18 = vmul.bf16 %v3515_v58, %v1512_v8  ;;  %v1501_v19 = vcvt.s32.f32 %v1485_v9  ;;  %v1007_v20 = vand.u32 15, %v991_v10  ;;  %v1471_v50 = vshra.s32 %v3534_v6, 20 }
 0x214   : > { %v1041_v22 = vmul.bf16 %v3547_v32, %v1033_v11  ;;  %v1022_v23 = vcvt.s32.f32 %v1006_v16  ;;  %v1486_v26 = vand.u32 15, %v1470_v17  ;;  %v992_v30 = vshra.s32 %v3551_v38, 4 }
 0x215   : > { %2256 = vmatpush3.bf16.msra.mxu1 %v1040_v7  ;;  %2336 = vmatpush3.bf16.msra.mxu0 %v1520_v18  ;;  %v1513_v33 = vpack.c.bf16 %v1501_v19, %v1500_v14  ;;  %v1023_v34 = vcvt.s32.f32 %v1007_v20  ;;  %v1487_v37 = vand.u32 15, %v1471_v50  ;;  %v993_v39 = vshra.s32 %v3554_v46, 4 }
 0x216   : > { %2257 = vmatprep.subr.bf16.mxu1 %v2937_v15  ;;  %2337 = vmatprep.subr.bf16.mxu0 %v2937_v15  ;;  %v1502_v44 = vcvt.s32.f32 %v1486_v26  ;;  %v1008_v51 = vand.u32 15, %v992_v30  ;;  %v1472_v45 = vshra.s32 %v3551_v38, 20  ;;  %v1473_v54 = vshra.s32 %v3554_v46, 20 }
 0x217   : > { %v1521_v55 = vmul.bf16 %v3547_v32, %v1513_v33  ;;  %v1034_v56 = vpack.c.bf16 %v1023_v34, %v1022_v23  ;;  %v1503_v57 = vcvt.s32.f32 %v1487_v37  ;;  %v1009_v59 = vand.u32 15, %v993_v39 }
 0x218   : > { %v1024_v35 = vcvt.s32.f32 %v1008_v51  ;;  %v1488_v27 = vand.u32 15, %v1472_v45  ;;  %v1489_v28 = vand.u32 15, %v1473_v54  ;;  %v994_v36 = vshra.s32 %v3571_v3, 4 }
 0x219   : > { %2258 = vmatpush3.bf16.msra.mxu1 %v1041_v22  ;;  %2338 = vmatpush3.bf16.msra.mxu0 %v1521_v55  ;;  %v1042_v62 = vmul.bf16 %v3575_v5, %v1034_v56  ;;  %v1514_v63 = vpack.c.bf16 %v1503_v57, %v1502_v44  ;;  %v1025_v31 = vcvt.s32.f32 %v1009_v59  ;;  %v995_v0 = vshra.s32 %v3582_v21, 4 }
 0x21a   : > { %2259 = vmatprep.subr.bf16.mxu1 %v2937_v15  ;;  %2339 = vmatprep.subr.bf16.mxu0 %v2937_v15  ;;  %v1504_v2 = vcvt.s32.f32 %v1488_v27  ;;  %v1505_v48 = vcvt.s32.f32 %v1489_v28  ;;  %v1010_v4 = vand.u32 15, %v994_v36  ;;  %v1474_v7 = vshra.s32 %v3571_v3, 20 }
 0x21b   : > { %v1522_v8 = vmul.bf16 %v3575_v5, %v1514_v63  ;;  %v1035_v9 = vpack.c.bf16 %v1025_v31, %v1024_v35  ;;  %v1011_v10 = vand.u32 15, %v995_v0  ;;  %v1475_v11 = vshra.s32 %v3582_v21, 20 }
 0x21c   : > { %v1515_v14 = vpack.c.bf16 %v1505_v48, %v1504_v2  ;;  %v1026_v16 = vcvt.s32.f32 %v1010_v4  ;;  %v1490_v17 = vand.u32 15, %v1474_v7  ;;  %v996_v18 = vshra.s32 %v3594_v52, 4 }
 0x21d   : > { %2260 = vmatpush3.bf16.msra.mxu1 %v1042_v62  ;;  %2340 = vmatpush3.bf16.msra.mxu0 %v1522_v8  ;;  %v1043_v19 = vmul.bf16 %v3596_v53, %v1035_v9  ;;  %v1027_v20 = vcvt.s32.f32 %v1011_v10  ;;  %v1491_v50 = vand.u32 15, %v1475_v11  ;;  %v997_v22 = vshra.s32 %v3601_v61, 4 }
 0x21e   : > { %2261 = vmatprep.subr.bf16.mxu1 %v2937_v15  ;;  %2341 = vmatprep.subr.bf16.mxu0 %v2937_v15  ;;  %v1523_v23 = vmul.bf16 %v3596_v53, %v1515_v14  ;;  %v1506_v26 = vcvt.s32.f32 %v1490_v17  ;;  %v1012_v30 = vand.u32 15, %v996_v18  ;;  %v1476_v33 = vshra.s32 %v3594_v52, 20 }
 0x21f   : > { %v1036_v34 = vpack.c.bf16 %v1027_v20, %v1026_v16  ;;  %v1507_v37 = vcvt.s32.f32 %v1491_v50  ;;  %v1013_v39 = vand.u32 15, %v997_v22  ;;  %v1477_v44 = vshra.s32 %v3601_v61, 20  ;;  %v2600_v22 = vld [vmem:[%s3382_s18 + $0x8] sm:$0xff]  }
 0x220   : > { %v1028_v51 = vcvt.s32.f32 %v1012_v30  ;;  %v1492_v45 = vand.u32 15, %v1476_v33  ;;  %v1102_v54 = vshra.s32 %v3423_v12, 8  ;;  %v1103_v55 = vshra.s32 %v3426_v13, 8 }
 0x221   : > { %2262 = vmatpush3.bf16.msra.mxu1 %v1043_v19  ;;  %2342 = vmatpush3.bf16.msra.mxu0 %v1523_v23  ;;  %v1044_v56 = vmul.bf16 %v3611_v1, %v1036_v34  ;;  %v1516_v57 = vpack.c.bf16 %v1507_v37, %v1506_v26  ;;  %v1029_v59 = vcvt.s32.f32 %v1013_v39  ;;  %v1493_v35 = vand.u32 15, %v1477_v44  ;;  %v2601_v26 = vld [vmem:[%s3382_s18 + $0x28] sm:$0xff]  }
 0x222   : > { %2263 = vmatprep.subr.bf16.mxu1 %v2937_v15  ;;  %2343 = vmatprep.subr.bf16.mxu0 %v2937_v15  ;;  %v1508_v27 = vcvt.s32.f32 %v1492_v45  ;;  %v1118_v28 = vand.u32 15, %v1102_v54  ;;  %v1119_v36 = vand.u32 15, %v1103_v55  ;;  %v1582_v62 = vshra.s32 %v3423_v12, 24 }
 0x223   : > { %v1524_v63 = vmul.bf16 %v3611_v1, %v1516_v57  ;;  %v1037_v31 = vpack.c.bf16 %v1029_v59, %v1028_v51  ;;  %v1509_v0 = vcvt.s32.f32 %v1493_v35  ;;  %v1583_v2 = vshra.s32 %v3426_v13, 24 }
 0x224   : > { %v1134_v48 = vcvt.s32.f32 %v1118_v28  ;;  %v1135_v4 = vcvt.s32.f32 %v1119_v36  ;;  %v1598_v7 = vand.u32 15, %v1582_v62  ;;  %v1104_v8 = vshra.s32 %v3437_v25, 8 }
 0x225   : > { %2264 = vmatpush3.bf16.msra.mxu1 %v1044_v56  ;;  %2344 = vmatpush3.bf16.msra.mxu0 %v1524_v63  ;;  %v1045_v9 = vmul.bf16 %v3631_v60, %v1037_v31  ;;  %v1517_v10 = vpack.c.bf16 %v1509_v0, %v1508_v27  ;;  %v1599_v11 = vand.u32 15, %v1583_v2  ;;  %v1105_v12 = vshra.s32 %v3444_v29, 8 }
 0x226   : > { %2265 = vmatprep.subr.bf16.mxu1 %v2937_v15  ;;  %2345 = vmatprep.subr.bf16.mxu0 %v2937_v15  ;;  %v1150_v13 = vpack.c.bf16 %v1135_v4, %v1134_v48  ;;  %v1614_v14 = vcvt.s32.f32 %v1598_v7  ;;  %v1120_v16 = vand.u32 15, %v1104_v8  ;;  %v1584_v17 = vshra.s32 %v3437_v25, 24 }
 0x227   : > { %v1525_v18 = vmul.bf16 %v3631_v60, %v1517_v10  ;;  %v1615_v19 = vcvt.s32.f32 %v1599_v11  ;;  %v1121_v20 = vand.u32 15, %v1105_v12  ;;  %v1585_v50 = vshra.s32 %v3444_v29, 24 }
 0x228   : > { %v1158_v23 = vmul.bf16 %v3493_v40, %v1150_v13  ;;  %v1136_v30 = vcvt.s32.f32 %v1120_v16  ;;  %v1600_v33 = vand.u32 15, %v1584_v17  ;;  %v1106_v34 = vshra.s32 %v3461_v43, 8 }
 0x229   : > { %2266 = vmatpush3.bf16.msra.mxu1 %v1045_v9  ;;  %2346 = vmatpush3.bf16.msra.mxu0 %v1525_v18  ;;  %v1630_v37 = vpack.c.bf16 %v1615_v19, %v1614_v14  ;;  %v1137_v39 = vcvt.s32.f32 %v1121_v20  ;;  %v1601_v44 = vand.u32 15, %v1585_v50  ;;  %v1107_v25 = vshra.s32 %v3466_v47, 8 }
 0x22a   : > { %2271 = vmatprep.subr.bf16.mxu1 %v2937_v15  ;;  %2351 = vmatprep.subr.bf16.mxu0 %v2937_v15  ;;  %v1616_v29 = vcvt.s32.f32 %v1600_v33  ;;  %v1122_v51 = vand.u32 15, %v1106_v34  ;;  %v1586_v45 = vshra.s32 %v3461_v43, 24  ;;  %v1587_v54 = vshra.s32 %v3466_v47, 24 }
 0x22b   : > { %v1638_v55 = vmul.bf16 %v3493_v40, %v1630_v37  ;;  %v1151_v56 = vpack.c.bf16 %v1137_v39, %v1136_v30  ;;  %v1617_v57 = vcvt.s32.f32 %v1601_v44  ;;  %v1123_v59 = vand.u32 15, %v1107_v25 }
 0x22c   : > { %2268 = vmatmul.mubr.bf16.vlgmr.msra.gmra.mrb[0].mxu1 %v2600_v22  ;;  %2348 = vmatmul.mubr.bf16.vlgmr.msra.gmra.mrb[0].mxu0 %v2601_v26  ;;  %v1138_v35 = vcvt.s32.f32 %v1122_v51  ;;  %v1602_v27 = vand.u32 15, %v1586_v45  ;;  %v1603_v28 = vand.u32 15, %v1587_v54  ;;  %v1108_v36 = vshra.s32 %v3487_v24, 8 }
 0x22d   : > { %2272 = vmatpush3.bf16.msra.mxu1 %v1158_v23  ;;  %2352 = vmatpush3.bf16.msra.mxu0 %v1638_v55  ;;  %v1159_v62 = vmul.bf16 %v3495_v41, %v1151_v56  ;;  %v1631_v63 = vpack.c.bf16 %v1617_v57, %v1616_v29  ;;  %v1139_v43 = vcvt.s32.f32 %v1123_v59  ;;  %v1109_v47 = vshra.s32 %v3498_v42, 8 }
 0x22e   : > { %2273 = vmatprep.subr.bf16.mxu1 %v2937_v15  ;;  %2353 = vmatprep.subr.bf16.mxu0 %v2937_v15  ;;  %v1618_v31 = vcvt.s32.f32 %v1602_v27  ;;  %v1619_v0 = vcvt.s32.f32 %v1603_v28  ;;  %v1124_v2 = vand.u32 15, %v1108_v36  ;;  %v1588_v48 = vshra.s32 %v3487_v24, 24 }
 0x22f   : > { %v1639_v4 = vmul.bf16 %v3495_v41, %v1631_v63  ;;  %v1152_v7 = vpack.c.bf16 %v1139_v43, %v1138_v35  ;;  %v1125_v8 = vand.u32 15, %v1109_v47  ;;  %v1589_v9 = vshra.s32 %v3498_v42, 24  ;;  %2287 = vmatprep.mubr.msk.bf16.mxu1 %vm2939_vm1, %v2937_v15  ;;  %2367 = vmatprep.mubr.msk.bf16.mxu0 %vm2939_vm1, %v2937_v15 }
 0x230   : > { %v1632_v10 = vpack.c.bf16 %v1619_v0, %v1618_v31  ;;  %v1140_v11 = vcvt.s32.f32 %v1124_v2  ;;  %v1604_v12 = vand.u32 15, %v1588_v48  ;;  %v1110_v13 = vshra.s32 %v3521_v49, 8 }
 0x231   : > { %2274 = vmatpush3.bf16.msra.mxu1 %v1159_v62  ;;  %2354 = vmatpush3.bf16.msra.mxu0 %v1639_v4  ;;  %v1160_v24 = vmul.bf16 %v3515_v58, %v1152_v7  ;;  %v1141_v14 = vcvt.s32.f32 %v1125_v8  ;;  %v1605_v16 = vand.u32 15, %v1589_v9  ;;  %v1111_v17 = vshra.s32 %v3534_v6, 8 }
 0x232   : > { %2275 = vmatprep.subr.bf16.mxu1 %v2937_v15  ;;  %2355 = vmatprep.subr.bf16.mxu0 %v2937_v15  ;;  %v1640_v42 = vmul.bf16 %v3515_v58, %v1632_v10  ;;  %v1620_v18 = vcvt.s32.f32 %v1604_v12  ;;  %v1126_v19 = vand.u32 15, %v1110_v13  ;;  %v1590_v20 = vshra.s32 %v3521_v49, 24 }
 0x233   : > { %v1153_v50 = vpack.c.bf16 %v1141_v14, %v1140_v11  ;;  %v1621_v22 = vcvt.s32.f32 %v1605_v16  ;;  %v1127_v23 = vand.u32 15, %v1111_v17  ;;  %v1591_v26 = vshra.s32 %v3534_v6, 24 }
 0x234   : > { %v1142_v30 = vcvt.s32.f32 %v1126_v19  ;;  %v1606_v33 = vand.u32 15, %v1590_v20  ;;  %v1112_v34 = vshra.s32 %v3551_v38, 8  ;;  %v1113_v37 = vshra.s32 %v3554_v46, 8 }
 0x235   : > { %2276 = vmatpush3.bf16.msra.mxu1 %v1160_v24  ;;  %2356 = vmatpush3.bf16.msra.mxu0 %v1640_v42  ;;  %v1161_v39 = vmul.bf16 %v3547_v32, %v1153_v50  ;;  %v1633_v44 = vpack.c.bf16 %v1621_v22, %v1620_v18  ;;  %v1143_v25 = vcvt.s32.f32 %v1127_v23  ;;  %v1607_v29 = vand.u32 15, %v1591_v26 }
 0x236   : > { %2277 = vmatprep.subr.bf16.mxu1 %v2937_v15  ;;  %2357 = vmatprep.subr.bf16.mxu0 %v2937_v15  ;;  %v1622_v49 = vcvt.s32.f32 %v1606_v33  ;;  %v1128_v51 = vand.u32 15, %v1112_v34  ;;  %v1129_v6 = vand.u32 15, %v1113_v37  ;;  %v1592_v45 = vshra.s32 %v3551_v38, 24 }
 0x237   : > { %v1641_v54 = vmul.bf16 %v3547_v32, %v1633_v44  ;;  %v1154_v55 = vpack.c.bf16 %v1143_v25, %v1142_v30  ;;  %v1623_v56 = vcvt.s32.f32 %v1607_v29  ;;  %v1593_v57 = vshra.s32 %v3554_v46, 24  ;;  %v2606_v30 = vld [vmem:[%s3389_s14] sm:$0xff]  ;;  %v2607_v44 = vld [vmem:[%s3389_s14 + $0x8] sm:$0xff] }
 0x238   : > { %v1144_v59 = vcvt.s32.f32 %v1128_v51  ;;  %v1145_v35 = vcvt.s32.f32 %v1129_v6  ;;  %v1608_v27 = vand.u32 15, %v1592_v45  ;;  %v1114_v28 = vshra.s32 %v3571_v3, 8 }
 0x239   : > { %2278 = vmatpush3.bf16.msra.mxu1 %v1161_v39  ;;  %2358 = vmatpush3.bf16.msra.mxu0 %v1641_v54  ;;  %v1162_v36 = vmul.bf16 %v3575_v5, %v1154_v55  ;;  %v1634_v62 = vpack.c.bf16 %v1623_v56, %v1622_v49  ;;  %v1609_v63 = vand.u32 15, %v1593_v57  ;;  %v1115_v43 = vshra.s32 %v3582_v21, 8 }
 0x23a   : > { %2279 = vmatprep.subr.bf16.mxu1 %v2937_v15  ;;  %2359 = vmatprep.subr.bf16.mxu0 %v2937_v15  ;;  %v1155_v38 = vpack.c.bf16 %v1145_v35, %v1144_v59  ;;  %v1624_v47 = vcvt.s32.f32 %v1608_v27  ;;  %v1130_v46 = vand.u32 15, %v1114_v28  ;;  %v1594_v31 = vshra.s32 %v3571_v3, 24  ;;  %v2608_v27 = vld [vmem:[%s3389_s14 + $0x10] sm:$0xff] }
 0x23b   : > { %v1642_v0 = vmul.bf16 %v3575_v5, %v1634_v62  ;;  %v1625_v2 = vcvt.s32.f32 %v1609_v63  ;;  %v1131_v48 = vand.u32 15, %v1115_v43  ;;  %v1595_v4 = vshra.s32 %v3582_v21, 24  ;;  %v2609_v43 = vld [vmem:[%s3389_s14 + $0x18] sm:$0xff] }
 0x23c   : > { %v1163_v7 = vmul.bf16 %v3596_v53, %v1155_v38  ;;  %v1146_v8 = vcvt.s32.f32 %v1130_v46  ;;  %v1610_v9 = vand.u32 15, %v1594_v31  ;;  %v1116_v10 = vshra.s32 %v3594_v52, 8 }
 0x23d   : > { %2280 = vmatpush3.bf16.msra.mxu1 %v1162_v36  ;;  %2360 = vmatpush3.bf16.msra.mxu0 %v1642_v0  ;;  %v1635_v11 = vpack.c.bf16 %v1625_v2, %v1624_v47  ;;  %v1147_v12 = vcvt.s32.f32 %v1131_v48  ;;  %v1611_v13 = vand.u32 15, %v1595_v4  ;;  %v1117_v24 = vshra.s32 %v3601_v61, 8 }
 0x23e   : > { %2281 = vmatprep.subr.bf16.mxu1 %v2937_v15  ;;  %2361 = vmatprep.subr.bf16.mxu0 %v2937_v15  ;;  %v1626_v14 = vcvt.s32.f32 %v1610_v9  ;;  %v1132_v16 = vand.u32 15, %v1116_v10  ;;  %v1596_v17 = vshra.s32 %v3594_v52, 24  ;;  %v1597_v42 = vshra.s32 %v3601_v61, 24  ;;  %v2602_v9 = vld [vmem:[%s3382_s18 + $0x10] sm:$0xff]  }
 0x23f   : > { %v1643_v18 = vmul.bf16 %v3596_v53, %v1635_v11  ;;  %v1156_v19 = vpack.c.bf16 %v1147_v12, %v1146_v8  ;;  %v1627_v20 = vcvt.s32.f32 %v1611_v13  ;;  %v1133_v50 = vand.u32 15, %v1117_v24  ;;  %v2603_v10 = vld [vmem:[%s3382_s18 + $0x30] sm:$0xff]   ;;  %v2611_v24 = vld [vmem:[%s3389_s14 + $0x28] sm:$0xff] }
 0x240   : > { %v1148_v22 = vcvt.s32.f32 %v1132_v16  ;;  %v1612_v23 = vand.u32 15, %v1596_v17  ;;  %v1613_v26 = vand.u32 15, %v1597_v42  ;;  %v1222_v33 = vshra.s32 %v2606_v30, 12 }
 0x241   : > { %2282 = vmatpush3.bf16.msra.mxu1 %v1163_v7  ;;  %2362 = vmatpush3.bf16.msra.mxu0 %v1643_v18  ;;  %v1164_v34 = vmul.bf16 %v3611_v1, %v1156_v19  ;;  %v1636_v37 = vpack.c.bf16 %v1627_v20, %v1626_v14  ;;  %v1149_v39 = vcvt.s32.f32 %v1133_v50  ;;  %v1223_v25 = vshra.s32 %v2607_v44, 12  ;;  %v2610_v7 = vld [vmem:[%s3389_s14 + $0x20] sm:$0xff] }
 0x242   : > { %2283 = vmatprep.subr.bf16.mxu1 %v2937_v15  ;;  %2363 = vmatprep.subr.bf16.mxu0 %v2937_v15  ;;  %v1628_v29 = vcvt.s32.f32 %v1612_v23  ;;  %v1629_v49 = vcvt.s32.f32 %v1613_v26  ;;  %v1238_v51 = vand.u32 15, %v1222_v33  ;;  %v2106_v6 = vshrl.u32 %v2606_v30, 28  ;;  %v2612_v30 = vld [vmem:[%s3389_s14 + $0x30] sm:$0xff] }
 0x243   : > { %v1644_v45 = vmul.bf16 %v3611_v1, %v1636_v37  ;;  %v1157_v54 = vpack.c.bf16 %v1149_v39, %v1148_v22  ;;  %v1239_v55 = vand.u32 15, %v1223_v25  ;;  %v2107_v56 = vshrl.u32 %v2607_v44, 28 }
 0x244   : > { %v1637_v57 = vpack.c.bf16 %v1629_v49, %v1628_v29  ;;  %v1254_v59 = vcvt.s32.f32 %v1238_v51  ;;  %v1734_v35 = vcvt.s32.f32 %v2106_v6  ;;  %v1224_v28 = vshra.s32 %v2608_v27, 12 }
 0x245   : > { %2284 = vmatpush3.bf16.msra.mxu1 %v1164_v34  ;;  %2364 = vmatpush3.bf16.msra.mxu0 %v1644_v45  ;;  %v1165_v36 = vmul.bf16 %v3631_v60, %v1157_v54  ;;  %v1255_v62 = vcvt.s32.f32 %v1239_v55  ;;  %v1735_v63 = vcvt.s32.f32 %v2107_v56  ;;  %v1225_v38 = vshra.s32 %v2609_v43, 12  ;;  %v2613_v34 = vld [vmem:[%s3389_s14 + $0x38] sm:$0xff]  ;;  %v2614_v56 = vld [vmem:[%s3389_s14 + $0x40] sm:$0xff] }
 0x246   : > { %2285 = vmatprep.subr.bf16.mxu1 %v2937_v15  ;;  %2365 = vmatprep.subr.bf16.mxu0 %v2937_v15  ;;  %v1645_v47 = vmul.bf16 %v3631_v60, %v1637_v57  ;;  %v1240_v46 = vand.u32 15, %v1224_v28  ;;  %v2108_v31 = vshrl.u32 %v2608_v27, 28  ;;  %v2109_v0 = vshrl.u32 %v2609_v43, 28  ;;  %v2615_v28 = vld [vmem:[%s3389_s14 + $0x48] sm:$0xff] }
 0x247   : > { %v1270_v2 = vpack.c.bf16 %v1255_v62, %v1254_v59  ;;  %v1750_v48 = vpack.c.bf16 %v1735_v63, %v1734_v35  ;;  %v1241_v4 = vand.u32 15, %v1225_v38  ;;  %v1226_v8 = vshra.s32 %v2610_v7, 12 }
 0x248   : > { %v1256_v11 = vcvt.s32.f32 %v1240_v46  ;;  %v1736_v12 = vcvt.s32.f32 %v2108_v31  ;;  %v1737_v13 = vcvt.s32.f32 %v2109_v0  ;;  %v1227_v14 = vshra.s32 %v2611_v24, 12 }
 0x249   : > { %2286 = vmatpush3.bf16.msra.mxu1 %v1165_v36  ;;  %2366 = vmatpush3.bf16.msra.mxu0 %v1645_v47  ;;  %v1278_v16 = vmul.bf16 %v3493_v40, %v1270_v2  ;;  %v1758_v17 = vmul.bf16 %v3493_v40, %v1750_v48  ;;  %v1257_v42 = vcvt.s32.f32 %v1241_v4  ;;  %v1242_v18 = vand.u32 15, %v1226_v8  ;;  %v2616_v48 = vld [vmem:[%s3389_s14 + $0x50] sm:$0xff] }
 0x24a   : > { %2291 = vmatprep.subr.bf16.mxu1 %v2937_v15  ;;  %2371 = vmatprep.subr.bf16.mxu0 %v2937_v15  ;;  %v1751_v19 = vpack.c.bf16 %v1737_v13, %v1736_v12  ;;  %v1243_v20 = vand.u32 15, %v1227_v14  ;;  %v2110_v50 = vshrl.u32 %v2610_v7, 28  ;;  %v2111_v22 = vshrl.u32 %v2611_v24, 28  ;;  %v2617_v7 = vld [vmem:[%s3389_s14 + $0x58] sm:$0xff] }
 0x24b   : > { %v1271_v23 = vpack.c.bf16 %v1257_v42, %v1256_v11  ;;  %v1258_v26 = vcvt.s32.f32 %v1242_v18  ;;  %v1228_v33 = vshra.s32 %v2612_v30, 12  ;;  %v1229_v37 = vshra.s32 %v2613_v34, 12 }
 0x24c   : > { %2288 = vmatmul.mubr.bf16.vlgmr.msra.gmra.mrb[0].mxu1 %v2602_v9  ;;  %2368 = vmatmul.mubr.bf16.vlgmr.msra.gmra.mrb[0].mxu0 %v2603_v10  ;;  %v1759_v40 = vmul.bf16 %v3495_v41, %v1751_v19  ;;  %v1259_v39 = vcvt.s32.f32 %v1243_v20  ;;  %v1738_v44 = vcvt.s32.f32 %v2110_v50  ;;  %v1739_v25 = vcvt.s32.f32 %v2111_v22 }
 0x24d   : > { %2292 = vmatpush3.bf16.msra.mxu1 %v1278_v16  ;;  %2372 = vmatpush3.bf16.msra.mxu0 %v1758_v17  ;;  %v1279_v29 = vmul.bf16 %v3495_v41, %v1271_v23  ;;  %v1244_v49 = vand.u32 15, %v1228_v33  ;;  %v1245_v51 = vand.u32 15, %v1229_v37  ;;  %v2112_v6 = vshrl.u32 %v2612_v30, 28  ;;  %v2618_v37 = vld [vmem:[%s3389_s14 + $0x60] sm:$0xff] }
 0x24e   : > { %2293 = vmatprep.subr.bf16.mxu1 %v2937_v15  ;;  %2373 = vmatprep.subr.bf16.mxu0 %v2937_v15  ;;  %v1272_v45 = vpack.c.bf16 %v1259_v39, %v1258_v26  ;;  %v1752_v54 = vpack.c.bf16 %v1739_v25, %v1738_v44  ;;  %v2113_v55 = vshrl.u32 %v2613_v34, 28  ;;  %v1230_v57 = vshra.s32 %v2614_v56, 12 }
 0x24f   : > { %v1260_v59 = vcvt.s32.f32 %v1244_v49  ;;  %v1261_v35 = vcvt.s32.f32 %v1245_v51  ;;  %v1740_v27 = vcvt.s32.f32 %v2112_v6  ;;  %v1231_v36 = vshra.s32 %v2615_v28, 12  ;;  %2307 = vmatprep.mubr.msk.bf16.mxu1 %vm2939_vm1, %v2937_v15  ;;  %2387 = vmatprep.mubr.msk.bf16.mxu0 %vm2939_vm1, %v2937_v15 }
 0x250   : > { %v1280_v41 = vmul.bf16 %v3515_v58, %v1272_v45  ;;  %v1760_v62 = vmul.bf16 %v3515_v58, %v1752_v54  ;;  %v1741_v63 = vcvt.s32.f32 %v2113_v55  ;;  %v1246_v43 = vand.u32 15, %v1230_v57 }
 0x251   : > { %2294 = vmatpush3.bf16.msra.mxu1 %v1279_v29  ;;  %2374 = vmatpush3.bf16.msra.mxu0 %v1759_v40  ;;  %v1273_v38 = vpack.c.bf16 %v1261_v35, %v1260_v59  ;;  %v1247_v47 = vand.u32 15, %v1231_v36  ;;  %v2114_v46 = vshrl.u32 %v2614_v56, 28  ;;  %v2115_v31 = vshrl.u32 %v2615_v28, 28 }
 0x252   : > { %2295 = vmatprep.subr.bf16.mxu1 %v2937_v15  ;;  %2375 = vmatprep.subr.bf16.mxu0 %v2937_v15  ;;  %v1753_v0 = vpack.c.bf16 %v1741_v63, %v1740_v27  ;;  %v1262_v2 = vcvt.s32.f32 %v1246_v43  ;;  %v1232_v4 = vshra.s32 %v2616_v48, 12  ;;  %v1233_v8 = vshra.s32 %v2617_v7, 12  ;;  %v2604_v43 = vld [vmem:[%s3382_s18 + $0x18] sm:$0xff]  }
 0x253   : > { %v1281_v58 = vmul.bf16 %v3547_v32, %v1273_v38  ;;  %v1263_v9 = vcvt.s32.f32 %v1247_v47  ;;  %v1742_v10 = vcvt.s32.f32 %v2114_v46  ;;  %v1743_v11 = vcvt.s32.f32 %v2115_v31  ;;  %v2605_v38 = vld [vmem:[%s3382_s18 + $0x38] sm:$0xff]  }
 0x254   : > { %v1761_v12 = vmul.bf16 %v3547_v32, %v1753_v0  ;;  %v1248_v13 = vand.u32 15, %v1232_v4  ;;  %v1249_v24 = vand.u32 15, %v1233_v8  ;;  %v2116_v14 = vshrl.u32 %v2616_v48, 28  ;;  %v928_v31 = vld [vmem:[#allocation2 + $0x8] sm:$0xff] }
 0x255   : > { %2296 = vmatpush3.bf16.msra.mxu1 %v1280_v41  ;;  %2376 = vmatpush3.bf16.msra.mxu0 %v1760_v62  ;;  %v1274_v16 = vpack.c.bf16 %v1263_v9, %v1262_v2  ;;  %v1754_v17 = vpack.c.bf16 %v1743_v11, %v1742_v10  ;;  %v2117_v42 = vshrl.u32 %v2617_v7, 28  ;;  %v1234_v18 = vshra.s32 %v3571_v3, 12 }
 0x256   : > { %2297 = vmatprep.subr.bf16.mxu1 %v2937_v15  ;;  %2377 = vmatprep.subr.bf16.mxu0 %v2937_v15  ;;  %v1264_v19 = vcvt.s32.f32 %v1248_v13  ;;  %v1265_v20 = vcvt.s32.f32 %v1249_v24  ;;  %v1744_v50 = vcvt.s32.f32 %v2116_v14  ;;  %v1235_v32 = vshra.s32 %v3582_v21, 12 }
 0x257   : > { %v1282_v22 = vmul.bf16 %v3575_v5, %v1274_v16  ;;  %v1762_v23 = vmul.bf16 %v3575_v5, %v1754_v17  ;;  %v1745_v26 = vcvt.s32.f32 %v2117_v42  ;;  %v1250_v30 = vand.u32 15, %v1234_v18 }
 0x258   : > { %v1275_v33 = vpack.c.bf16 %v1265_v20, %v1264_v19  ;;  %v1251_v34 = vand.u32 15, %v1235_v32  ;;  %v2118_v40 = vshrl.u32 %v2618_v37, 28  ;;  %v2119_v3 = vshrl.u32 %v3582_v21, 28 }
 0x259   : > { %2298 = vmatpush3.bf16.msra.mxu1 %v1281_v58  ;;  %2378 = vmatpush3.bf16.msra.mxu0 %v1761_v12  ;;  %v1755_v39 = vpack.c.bf16 %v1745_v26, %v1744_v50  ;;  %v1266_v44 = vcvt.s32.f32 %v1250_v30  ;;  %v1236_v25 = vshra.s32 %v3594_v52, 12  ;;  %v1237_v29 = vshra.s32 %v3601_v61, 12  ;;  %v2126_v12 = vld [vmem:[%s456_s27] ss:$0 sm:$0xff] (!%p2125_p6) }
 0x25a   : > { %2299 = vmatprep.subr.bf16.mxu1 %v2937_v15  ;;  %2379 = vmatprep.subr.bf16.mxu0 %v2937_v15  ;;  %v1267_v5 = vcvt.s32.f32 %v1251_v34  ;;  %v1746_v49 = vcvt.s32.f32 %v2118_v40  ;;  %v1747_v51 = vcvt.s32.f32 %v2119_v3  ;;  %v2120_v54 = vshrl.u32 %v3594_v52, 28 }
 0x25b   : > { %v1252_v6 = vand.u32 15, %v1236_v25  ;;  %v1253_v45 = vand.u32 15, %v1237_v29  ;;  %v1283_v21 = vmul.bf16 %v3596_v53, %v1275_v33  ;;  %v1763_v55 = vmul.bf16 %v3596_v53, %v1755_v39 }
 0x25c   : > { %v1276_v56 = vpack.c.bf16 %v1267_v5, %v1266_v44  ;;  %v2121_v57 = vshrl.u32 %v3601_v61, 28  ;;  %v1756_v59 = vpack.c.bf16 %v1747_v51, %v1746_v49  ;;  %v1748_v28 = vcvt.s32.f32 %v2120_v54 }
 0x25d   : > { %2300 = vmatpush3.bf16.msra.mxu1 %v1282_v22  ;;  %2380 = vmatpush3.bf16.msra.mxu0 %v1762_v23  ;;  %v1268_v35 = vcvt.s32.f32 %v1252_v6  ;;  %v1269_v27 = vcvt.s32.f32 %v1253_v45 }
 0x25e   : > { %2301 = vmatprep.subr.bf16.mxu1 %v2937_v15  ;;  %2381 = vmatprep.subr.bf16.mxu0 %v2937_v15  ;;  %v1749_v36 = vcvt.s32.f32 %v2121_v57  ;;  %v1284_v52 = vmul.bf16 %v3611_v1, %v1276_v56  ;;  %v1764_v53 = vmul.bf16 %v3611_v1, %v1756_v59  ;;  %v927_v1 = vld [vmem:[#allocation2] sm:$0xff] }
 0x25f   : > { %v1277_v61 = vpack.c.bf16 %v1269_v27, %v1268_v35 }
 0x260   : > { %v1757_v41 = vpack.c.bf16 %v1749_v36, %v1748_v28 }
 0x261   : > { %2302 = vmatpush3.bf16.msra.mxu1 %v1283_v21  ;;  %2382 = vmatpush3.bf16.msra.mxu0 %v1763_v55  ;;  %v1285_v62 = vmul.bf16 %v3631_v60, %v1277_v61 }
 0x262   : > { %2303 = vmatprep.subr.bf16.mxu1 %v2937_v15  ;;  %2383 = vmatprep.subr.bf16.mxu0 %v2937_v15  ;;  %v1765_v63 = vmul.bf16 %v3631_v60, %v1757_v41 }
 0x265   : > { %2304 = vmatpush3.bf16.msra.mxu1 %v1284_v52  ;;  %2384 = vmatpush3.bf16.msra.mxu0 %v1764_v53 }
 0x266   : > { %2305 = vmatprep.subr.bf16.mxu1 %v2937_v15  ;;  %2385 = vmatprep.subr.bf16.mxu0 %v2937_v15 }
 0x269   : > { %2306 = vmatpush3.bf16.msra.mxu1 %v1285_v62  ;;  %2386 = vmatpush3.bf16.msra.mxu0 %v1765_v63 }
 0x26c   : > { %2308 = vmatmul.mubr.bf16.vlgmr.msra.gmra.mrb[0].mxu1 %v2604_v43  ;;  %2388 = vmatmul.mubr.bf16.vlgmr.msra.gmra.mrb[0].mxu0 %v2605_v38 }
 0x33f   : > { %v1331_v47 = vpop.f32.mrb[0].mxu1  ;;  %v1811_v46 = vpop.f32.mrb[0].mxu0 }
 0x340   : > { %v2401_v0 = vadd.f32 %v1331_v47, %v927_v1  ;;  %v2309_v2 = vpop.f32.mrb[1].mxu1  ;;  %v2389_v48 = vpop.f32.mrb[1].mxu0  ;;  %1825 = sbr.rel (%p2125_p6) target bundleno = 851 (0x353), region = 72 }
 0x341   : > { %v1334_v4 = vpop.f32.mrb[2].mxu1  ;;  %v1814_v7 = vpop.f32.mrb[2].mxu0 }
 0x342   : > { %v2404_v60 = vadd.f32 %v2401_v0, %v1811_v46  ;;  %v2407_v8 = vadd.f32 %v1334_v4, %v928_v31  ;;  %v2310_v58 = vpop.f32.mrb[3].mxu1  ;;  %v2390_v9 = vpop.f32.mrb[3].mxu0 }
 0x344   : > { %1820 = vst [vmem:[#allocation2] sm:$0xff] %v2404_v60  ;;  %v2410_v15 = vadd.f32 %v2407_v8, %v1814_v7 }
 0x346   : > { %1821 = vst [vmem:[#allocation2 + $0x8] sm:$0xff] %v2410_v15 }
 0x34b   : > { %v1826_v10 = vld [vmem:[#allocation2] sm:$0xff] }
 0x34c   : > { %v1835_v13 = vadd.f32 %v2126_v12, %v1826_v10 }
 0x34d   : > { %v1827_v11 = vld [vmem:[#allocation2 + $0x8] sm:$0xff] }
 0x34e   : > { %v1836_v24 = vadd.f32 %v2126_v12, %v1827_v11 }
 0x350   : > { %v2140_v14 = vpack.c.bf16 %v1836_v24, %v1835_v13 }
 0x352   : > { %2141 = vst [vmem:[%s3419_s1] sm:$0xff] %v2140_v14  }
 0x353 PF: > { %s4023_s0 = sld [smem:[#allocation22_spill]]  ;;  %s4024_s17 = sld [smem:[#allocation35_spill]] }
 0x354   : > { %s1863_s19 = sshll.u32 %s3419_s1, 4  ;;  %s1848_s13 = scalar_lea.sflag [#allocation5], %s3403_s15  ;;  %s3843_s19 = int_to_ptr.vmem [resolvable:$true] %s1863_s19 }
 0x355   : > { %s2767_s29 = scalar_lea.vmem %s3843_s19, 128  ;;  %s2940_s5 = smov [#allocation12]  }
 0x356   : > { %p2768_p7 = scmp.ne.s32.totalorder %s3843_s19, %s2767_s29  ;;  %s2771_s26 = sshll.u32 %s2940_s5, 4  ;;  %s2772_s26 = int_to_ptr.vmem [resolvable:$false] %s2771_s26 }
 0x357   : > { %s2773_s12 = scalar_lea.vmem %s2772_s26, 256  ;;  %p2774_p5 = scmp.lt.s32.totalorder %s3843_s19, %s2772_s26 }
 0x358   : > { %p2769_p8 = pnand %p2768_p7, %p3332_p9  ;;  %p2775_p10 = scmp.lt.s32.totalorder %s2773_s12, %s2767_s29 }
 0x359   : > { %s2130_s14 = sshll.u32 %s4023_s0, 6 }
 0x35a   : > { %s3840_s16 = scalar_lea.hbm %s4024_s17, %s2130_s14  ;;  %p2770_p3 = pneg %p2769_p8 }
 0x35b   : > { %p2776_p4 = por %p2775_p10, %p2774_p5 }
 0x35d   : > { %p2777_p2 = pnand %p2776_p4, %p2770_p3 }
 0x35f   : > { %2780 = shalt.err (!%p2777_p2)
}
 0x360   : > { %s2781_s27 = scalar_lea.hbm %s3840_s16, 128  ;;  %s2785_s30 = scalar_lea.hbm %s4024_s17, 256 }
 0x361   : > { %p2782_p11 = scmp.ne.s32.totalorder %s3840_s16, %s2781_s27  ;;  %p2786_p1 = scmp.lt.u32.totalorder %s3840_s16, %s4024_s17 }
 0x362   : > { %p2787_p0 = scmp.lt.u32.totalorder %s2785_s30, %s2781_s27  ;;  %p2789_p7 = scmp.lt.u32.totalorder %s2781_s27, %s3840_s16 }
 0x363   : > { %p2783_p13 = pnand %p2782_p11, %p3332_p9 }
 0x364   : > { %p2788_p6 = por %p2787_p0, %p2786_p1 }
 0x365   : > { %p2784_p12 = pneg %p2783_p13 }
 0x366   : > { %p2790_p8 = por %p2789_p7, %p2788_p6 }
 0x368   : > { %p2791_p3 = pnand %p2790_p8, %p2784_p12 }
 0x36a   : > { %2794 = shalt.err (!%p2791_p3)
}
 0x36b   : > { %s2941_s21 = smov 64   ;;  %s2942_s0 = smov 128  }
 0x36c   : > { %s2943_s14 = smov 4  }
 0x36d   : > { %2447 = dma.vmem_to_hbm [thread:$0]  (%p3332_p9), %s3843_s19, 128, %s3840_s16, %s1848_s13, %s2941_s21, %s2942_s0, %s2943_s14  }
 0x36e PF: > { %s4025_s7 = sld [smem:[#allocation18_spill]]  ;;  %s4026_s8 = sld [smem:[#allocation31_spill]] }
 0x36f   : > { %p2473_p5 = scmp.ge.s32.totalorder %s2925_s10, 2 }
 0x374   : > { %s1878_s29 = sand.u32 1, %s4025_s7   ;;  %p4027_p10 = scmp.ne.s32.totalorder %s4026_s8, 0 }
 0x375   : > { %s1879_s5 = scalar_lea.sflag [#allocation5], %s1878_s29 }
 0x376   : > { %p2467_p4 = pnand %p2473_p5, %p4027_p10 }
 0x378   : > { %2868 = dma.done.wait (!%p2467_p4), %s1879_s5, 128  }
 0x379   : > { %2870 = vsyncadd (!%p2467_p4), %s1879_s5, 4294967168  ;;  %s26_s10 = sadd.s32 1, %s2925_s10   ;;  %s4029_s15 = sld [smem:[#allocation19_spill]] }
 0x37a   : > { %p3874_p2 = scmp.ge.s32.totalorder %s26_s10, 6   ;;  %s4030_s16 = sld [smem:[#allocation28_spill]] }
 0x37b   : > { %s4031_s19 = sld [smem:[#allocation20_spill]]  ;;  %s4032_s29 = sld [smem:[#allocation25_spill]] }
 0x37c   : > { %s4033_s30 = sld [smem:[#allocation23_spill]]  ;;  %s4034_s8 = sld [smem:[#allocation24_spill]] }
 0x37d   : > { %s4035_s13 = sld [smem:[#allocation27_spill]]  ;;  %s4037_s21 = smov %s2877_s22 }
 0x37e   : > { %s4038_s22 = smov %s2881_s23  ;;  %s4039_s23 = smov %s3322_s20 }
 0x37f   : > { %s4040_s24 = smov %s2889_s25  ;;  %s4041_s25 = smov %s4029_s15 }
 0x380   : > { %s4042_s26 = smov %s4030_s16  ;;  %s4043_s27 = smov %s2901_s28 }
 0x381   : > { %s4044_s28 = smov %s4031_s19  ;;  %s4045_s7 = smov %s2921_s9 }
 0x382   :  { %25 = sbr.rel (!%p3874_p2) target bundleno = 18 (0x12), region = 147 }
 0x383   : > { %s4046_s9 = smov %s4035_s13 }
 0x389   :  { %1884 = vsyncpa [#allocation4], 1 }
 0x38a   :  { %1886 = vsyncpa [#allocation4 + $0x1], 1 }
 0x38b   :  { %1887 = vsyncpa [#allocation7], 1 }
 0x38c   :  { %1889 = vsyncpa [#allocation7 + $0x1], 1 }
 0x38d   :  { %1890 = vsyncpa [#allocation10], 1 }
 0x38e   :  { %1891 = vsyncpa [#allocation5], 1 }
 0x38f   :  { %1893 = vsyncpa [#allocation5 + $0x1], 1 }

</bundles_post_ra>
